<compile_context>
chip_gen: v7x
topology: tpu7x:2x2x1
jax: 0.10.0
libtpu: 0.0.40
codegen_flags: <defaults>
</compile_context>

<pallas_src>
import functools
import math

import jax
import jax.numpy as jnp
import numpy as np
from jax.experimental import pallas as pl
from jax.experimental.pallas import tpu as pltpu

EMBED_DIM = 32
NUM_HEADS = 1
FFN_DIM = 2048              # PyTorch default dim_feedforward
NUM_LAYERS = 2
LN_EPS = 1e-5
QKV_PAD = 128               # 3 * EMBED_DIM = 96, zero-padded to a full lane tile


def _layernorm(x, w, b):
    mean = jnp.mean(x, axis=-1, keepdims=True)
    var = jnp.mean((x - mean) ** 2, axis=-1, keepdims=True)
    return (x - mean) * jax.lax.rsqrt(var + LN_EPS) * w + b


def prelude_kernel(x_ref,
                   wqkv_ref, bqkv_ref, wo_ref, bo_ref,
                   w1_ref, b1_ref, w2_ref, b2_ref,
                   n1w_ref, n1b_ref, n2w_ref, n2b_ref,
                   out_ref, *, batch):
    """One grid step == one encoder layer. out_ref is the resident carry."""
    l = pl.program_id(0)
    M, E = x_ref.shape                       # M = S * B (flattened), E = 32
    scale = 1.0 / math.sqrt(E // NUM_HEADS)

    # ---- layer 0: seed the resident carry from the input block ----
    @pl.when(l == 0)
    def _():
        out_ref[...] = x_ref[...]

    x = out_ref[...]                         # (M, E) f32 carry (VMEM-resident)

    # ---- fused single-head self-attention (nhead=1, head_dim=E) ----
    # one lane-dense bf16 projection: (M, E) @ (E, 128); cols 96.. are zero.
    qkv = jnp.dot(x.astype(jnp.bfloat16), wqkv_ref[0],
                  preferred_element_type=jnp.float32) + bqkv_ref[0]
    q = qkv[:, 0 * E:1 * E].astype(jnp.bfloat16)
    k = qkv[:, 1 * E:2 * E].astype(jnp.bfloat16)
    v = qkv[:, 2 * E:3 * E].astype(jnp.bfloat16)

    # single masked attention: (M, M) scores, block-diagonal same-batch mask.
    scores = jax.lax.dot_general(q, k, (((1,), (1,)), ((), ())),
                                 preferred_element_type=jnp.float32) * scale
    # flattened row index i = s * batch + b  =>  batch id of row i is i % batch
    row_b = jax.lax.broadcasted_iota(jnp.int32, (M, M), 0) % batch
    col_b = jax.lax.broadcasted_iota(jnp.int32, (M, M), 1) % batch
    scores = jnp.where(row_b == col_b, scores, -1e30)

    scores = scores - jnp.max(scores, axis=-1, keepdims=True)
    p = jnp.exp(scores)
    inv_denom = pl.reciprocal(jnp.sum(p, axis=-1, keepdims=True), approx=True)
    ctx = jnp.dot((p * inv_denom).astype(jnp.bfloat16), v,
                  preferred_element_type=jnp.float32)           # (M, E) f32

    attn_out = jnp.dot(ctx.astype(jnp.bfloat16), wo_ref[0],
                       preferred_element_type=jnp.float32) + bo_ref[0]

    # TODO(synk): training-mode dropout not implemented (inference semantics).
    x = _layernorm(x + attn_out, n1w_ref[0], n1b_ref[0])        # post-norm

    # ---- feed-forward: bf16 weights & activations, f32 accumulation ----
    h = jnp.dot(x.astype(jnp.bfloat16), w1_ref[0],
                preferred_element_type=jnp.float32) + b1_ref[0]
    h = jnp.maximum(h, 0.0).astype(jnp.bfloat16)                # halve live range
    ff = jnp.dot(h, w2_ref[0],
                 preferred_element_type=jnp.float32) + b2_ref[0]
    x = _layernorm(x + ff, n2w_ref[0], n2b_ref[0])

    out_ref[...] = x                                            # carry / result


def prelude_block_forward(x_sbe, params):
    """x_sbe: (S, B, E) float32 (PyTorch layout). params: 12 stacked arrays
    with a leading NUM_LAYERS axis. Returns (S, B, E) float32."""
    S, B, E = x_sbe.shape
    L = params[0].shape[0]
    F = FFN_DIM
    M = S * B

    # free contiguous reshape: (S, B, E) -> (S*B, E); row i = s*B + b
    x_flat = x_sbe.reshape(M, E)

    def layer_spec(p):
        return pl.BlockSpec((1,) + p.shape[1:], lambda l: (l, 0, 0))

    in_specs = [pl.BlockSpec((M, E), lambda l: (0, 0))]
    in_specs += [layer_spec(p) for p in params]
    out_spec = pl.BlockSpec((M, E), lambda l: (0, 0))   # constant => resident carry

    # advisory cost estimate (workload is launch/DMA-overhead bound)
    flops_layer = (2 * M * E * QKV_PAD                  # fused qkv proj
                   + 2 * (2 * M * M * E)                # scores + context
                   + 2 * M * E * E                      # out proj
                   + 4 * M * E * F)                     # ffn (2 matmuls)
    transc = L * (M * M + 3 * M)                        # exp + rsqrt + rcp
    weight_bytes = sum(int(p.size) * p.dtype.itemsize for p in params)
    bytes_accessed = weight_bytes + 2 * M * E * 4

    out = pl.pallas_call(
        functools.partial(prelude_kernel, batch=B),
        out_shape=jax.ShapeDtypeStruct((M, E), jnp.float32),
        grid_spec=pltpu.PrefetchScalarGridSpec(
            num_scalar_prefetch=0,
            grid=(L,),
            in_specs=in_specs,
            out_specs=out_spec),
        compiler_params=pltpu.CompilerParams(
            dimension_semantics=("arbitrary",)),
        cost_estimate=pl.CostEstimate(
            flops=int(L * flops_layer), transcendentals=int(transc),
            bytes_accessed=int(bytes_accessed)),
    )(x_flat, *params)

    return out.reshape(S, B, E)


def init_layer_params(key, E=EMBED_DIM, F=FFN_DIM):
    ks = jax.random.split(key, 12)
    s_e = 1.0 / math.sqrt(E)
    s_f = 1.0 / math.sqrt(F)
    wq = jax.random.normal(ks[0], (E, E), jnp.float32) * s_e
    wk = jax.random.normal(ks[1], (E, E), jnp.float32) * s_e
    wv = jax.random.normal(ks[2], (E, E), jnp.float32) * s_e
    bq = jax.random.normal(ks[3], (1, E), jnp.float32) * 0.02
    bk = jax.random.normal(ks[4], (1, E), jnp.float32) * 0.02
    bv = jax.random.normal(ks[5], (1, E), jnp.float32) * 0.02
    # fused + zero-padded (lane-dense) QKV projection, stored pre-transposed.
    # NOTE: correctness relies on padded cols 96..127 staying exactly zero.
    wqkv = jnp.zeros((E, QKV_PAD), jnp.float32)
    wqkv = wqkv.at[:, :3 * E].set(jnp.concatenate([wq, wk, wv], axis=1))
    wqkv = wqkv.astype(jnp.bfloat16)
    bqkv = jnp.zeros((1, QKV_PAD), jnp.float32)
    bqkv = bqkv.at[:, :3 * E].set(jnp.concatenate([bq, bk, bv], axis=1))
    wo = (jax.random.normal(ks[6], (E, E), jnp.float32) * s_e).astype(jnp.bfloat16)
    bo = jax.random.normal(ks[7], (1, E), jnp.float32) * 0.02
    # FFN weights in bf16 in HBM (halves the dominant weight DMA, native MXU mode)
    w1 = (jax.random.normal(ks[8], (E, F), jnp.float32) * s_e).astype(jnp.bfloat16)
    b1 = jax.random.normal(ks[9], (1, F), jnp.float32) * 0.02
    w2 = (jax.random.normal(ks[10], (F, E), jnp.float32) * s_f).astype(jnp.bfloat16)
    b2 = jax.random.normal(ks[11], (1, E), jnp.float32) * 0.02
    n1w = jnp.ones((1, E), jnp.float32)
    n1b = jnp.zeros((1, E), jnp.float32)
    n2w = jnp.ones((1, E), jnp.float32)
    n2b = jnp.zeros((1, E), jnp.float32)
    return (wqkv, bqkv, wo, bo, w1, b1, w2, b2, n1w, n1b, n2w, n2b)


def stack_params(per_layer):
    n = len(per_layer[0])
    return tuple(jnp.stack([lp[i] for lp in per_layer]) for i in range(n))


# ---------------- pure-JAX f32 reference (sanity check) ----------------
def _ref_layer(x_bse, p):
    (wqkv, bqkv, wo, bo, w1, b1, w2, b2, n1w, n1b, n2w, n2b) = p
    E = x_bse.shape[-1]
    wqkv = wqkv.astype(jnp.float32)
    wo = wo.astype(jnp.float32)
    w1 = w1.astype(jnp.float32)
    w2 = w2.astype(jnp.float32)
    q = x_bse @ wqkv[:, 0 * E:1 * E] + bqkv[:, 0 * E:1 * E]
    k = x_bse @ wqkv[:, 1 * E:2 * E] + bqkv[:, 1 * E:2 * E]
    v = x_bse @ wqkv[:, 2 * E:3 * E] + bqkv[:, 2 * E:3 * E]
    scores = jnp.einsum("bse,bte->bst", q, k) / math.sqrt(E // NUM_HEADS)
    attn = jax.nn.softmax(scores, axis=-1)
    ctx = jnp.einsum("bst,bte->bse", attn, v)
    x = _layernorm(x_bse + ctx @ wo + bo, n1w, n1b)
    h = jnp.maximum(x @ w1 + b1, 0.0)
    return _layernorm(x + h @ w2 + b2, n2w, n2b)


def ref_forward(x_sbe, params):
    x = jnp.transpose(x_sbe, (1, 0, 2))            # (B, S, E)
    L = params[0].shape[0]
    for l in range(L):
        x = _ref_layer(x, tuple(a[l] for a in params))
    return jnp.transpose(x, (1, 0, 2))             # (S, B, E)


if __name__ == "__main__":
    key = jax.random.PRNGKey(0)
    k_x, k_p = jax.random.split(key)

    S, B, E = 8, 2, EMBED_DIM
    x = jax.random.normal(k_x, (S, B, E), dtype=jnp.float32)   # PyTorch (S, B, E)

    layer_keys = jax.random.split(k_p, NUM_LAYERS)
    params = stack_params([init_layer_params(k) for k in layer_keys])

    out = prelude_block_forward(x, params)
    out = jax.block_until_ready(out)
    assert out.shape == (S, B, E), out.shape

    ref = ref_forward(x, params)
    # Kernel runs bf16 MXU inputs (f32 accumulation) + approx reciprocal in the
    # softmax; reference is full f32 with the same (bf16-stored) weights, so a
    # slightly loosened tolerance covers the activation-rounding difference.
    np.testing.assert_allclose(np.asarray(out), np.asarray(ref),
                               rtol=2e-2, atol=2e-2)

    print("KERNEL_OK")
</pallas_src>

<mosaic_0001>
module attributes {stable_mosaic.version = 11 : i64} {
  func.func @prelude_kernel(%arg0: i32, %arg1: memref<16x32xf32, #tpu.memory_space<vmem>>, %arg2: memref<1x32x128xbf16, #tpu.memory_space<vmem>>, %arg3: memref<1x1x128xf32, #tpu.memory_space<vmem>>, %arg4: memref<1x32x32xbf16, #tpu.memory_space<vmem>>, %arg5: memref<1x1x32xf32, #tpu.memory_space<vmem>>, %arg6: memref<1x32x2048xbf16, #tpu.memory_space<vmem>>, %arg7: memref<1x1x2048xf32, #tpu.memory_space<vmem>>, %arg8: memref<1x2048x32xbf16, #tpu.memory_space<vmem>>, %arg9: memref<1x1x32xf32, #tpu.memory_space<vmem>>, %arg10: memref<1x1x32xf32, #tpu.memory_space<vmem>>, %arg11: memref<1x1x32xf32, #tpu.memory_space<vmem>>, %arg12: memref<1x1x32xf32, #tpu.memory_space<vmem>>, %arg13: memref<1x1x32xf32, #tpu.memory_space<vmem>>, %arg14: memref<16x32xf32, #tpu.memory_space<vmem>>) attributes {dimension_semantics = [#tpu.dimension_semantics<arbitrary>], iteration_bounds = array<i64: 2>, scalar_prefetch = 0 : i64, scratch_operands = 0 : i64, tpu.core_type = #tpu.core_type<tc>, window_params = [{pipeline_mode = #tpu.pipeline_mode<synchronous>, transform_indices = @transform_0, window_bounds = array<i64: 16, 32>}, {transform_indices = @transform_1, window_bounds = array<i64: 1, 32, 128>}, {transform_indices = @transform_2, window_bounds = array<i64: 1, 1, 128>}, {transform_indices = @transform_3, window_bounds = array<i64: 1, 32, 32>}, {transform_indices = @transform_4, window_bounds = array<i64: 1, 1, 32>}, {transform_indices = @transform_5, window_bounds = array<i64: 1, 32, 2048>}, {transform_indices = @transform_6, window_bounds = array<i64: 1, 1, 2048>}, {transform_indices = @transform_7, window_bounds = array<i64: 1, 2048, 32>}, {transform_indices = @transform_8, window_bounds = array<i64: 1, 1, 32>}, {transform_indices = @transform_9, window_bounds = array<i64: 1, 1, 32>}, {transform_indices = @transform_10, window_bounds = array<i64: 1, 1, 32>}, {transform_indices = @transform_11, window_bounds = array<i64: 1, 1, 32>}, {transform_indices = @transform_12, window_bounds = array<i64: 1, 1, 32>}, {pipeline_mode = #tpu.pipeline_mode<synchronous>, transform_indices = @transform_13, window_bounds = array<i64: 16, 32>}]} {
    %c0_i32 = arith.constant 0 : i32
    %0 = arith.cmpi eq, %arg0, %c0_i32 : i32
    %1 = arith.extui %0 : i1 to i32
    %c0_i32_0 = arith.constant 0 : i32
    %2 = arith.cmpi ne, %1, %c0_i32_0 : i32
    scf.if %2 {
      %c0_70 = arith.constant 0 : index
      %c0_71 = arith.constant 0 : index
      %151 = vector.load %arg1[%c0_70, %c0_71] : memref<16x32xf32, #tpu.memory_space<vmem>>, vector<16x32xf32>
      %c0_72 = arith.constant 0 : index
      %c0_73 = arith.constant 0 : index
      %152 = vector.load %arg14[%c0_72, %c0_73] : memref<16x32xf32, #tpu.memory_space<vmem>>, vector<16x32xf32>
      tpu.vector_store %arg14[%c0_72, %c0_73], %151 {strides = array<i32>} : memref<16x32xf32, #tpu.memory_space<vmem>>, vector<16x32xf32>,
    } else {
    }
    %c0 = arith.constant 0 : index
    %c0_1 = arith.constant 0 : index
    %3 = vector.load %arg14[%c0, %c0_1] : memref<16x32xf32, #tpu.memory_space<vmem>>, vector<16x32xf32>
    %4 = arith.truncf %3 : vector<16x32xf32> to vector<16x32xbf16>
    %c0_2 = arith.constant 0 : index
    %c0_3 = arith.constant 0 : index
    %c0_4 = arith.constant 0 : index
    %5 = vector.load %arg2[%c0_2, %c0_3, %c0_4] : memref<1x32x128xbf16, #tpu.memory_space<vmem>>, vector<1x32x128xbf16>
    %6 = vector.shape_cast %5 : vector<1x32x128xbf16> to vector<32x128xbf16>
    %cst = arith.constant dense<0.000000e+00> : vector<16x128xf32>
    %7 = tpu.matmul %4, %6, %cst {dimension_numbers = #tpu.dot_dimension_numbers<[1], [0], [0], [1], [0, 0, 1, 1], [], []>} : vector<16x32xbf16>, vector<32x128xbf16>, vector<16x128xf32> -> vector<16x128xf32>
    %c0_5 = arith.constant 0 : index
    %c0_6 = arith.constant 0 : index
    %c0_7 = arith.constant 0 : index
    %8 = vector.load %arg3[%c0_5, %c0_6, %c0_7] : memref<1x1x128xf32, #tpu.memory_space<vmem>>, vector<1x1x128xf32>
    %9 = vector.shape_cast %8 : vector<1x1x128xf32> to vector<1x128xf32>
    %10 = vector.broadcast %9 : vector<1x128xf32> to vector<16x128xf32>
    %11 = arith.addf %7, %10 : vector<16x128xf32>
    %12 = vector.extract_strided_slice %11 {offsets = [0, 0], sizes = [16, 32], strides = [1, 1]} : vector<16x128xf32> to vector<16x32xf32>
    %13 = arith.truncf %12 : vector<16x32xf32> to vector<16x32xbf16>
    %14 = vector.extract_strided_slice %11 {offsets = [0, 32], sizes = [16, 32], strides = [1, 1]} : vector<16x128xf32> to vector<16x32xf32>
    %15 = arith.truncf %14 : vector<16x32xf32> to vector<16x32xbf16>
    %16 = vector.extract_strided_slice %11 {offsets = [0, 64], sizes = [16, 32], strides = [1, 1]} : vector<16x128xf32> to vector<16x32xf32>
    %17 = arith.truncf %16 : vector<16x32xf32> to vector<16x32xbf16>
    %cst_8 = arith.constant dense<0.000000e+00> : vector<16x16xf32>
    %18 = tpu.matmul %13, %15, %cst_8 {dimension_numbers = #tpu.dot_dimension_numbers<[1], [1], [0], [0], [0, 0, 1, 0], [], []>} : vector<16x32xbf16>, vector<16x32xbf16>, vector<16x16xf32> -> vector<16x16xf32>
    %cst_9 = arith.constant 0.176776692 : f32
    %19 = vector.broadcast %cst_9 : f32 to vector<16x16xf32>
    %20 = arith.mulf %18, %19 : vector<16x16xf32>
    %21 = tpu.iota {dimensions = array<i32: 0>} : vector<16x16xi32>
    %c2_i32 = arith.constant 2 : i32
    %c0_i32_10 = arith.constant 0 : i32
    %22 = arith.cmpi eq, %c2_i32, %c0_i32_10 : i32
    %c1_i32 = arith.constant 1 : i32
    %23 = arith.select %22, %c1_i32, %c2_i32 : i32
    %24 = vector.broadcast %23 : i32 to vector<16x16xi32>
    %25 = arith.remsi %21, %24 : vector<16x16xi32>
    %c0_i32_11 = arith.constant 0 : i32
    %26 = vector.broadcast %c0_i32_11 : i32 to vector<16x16xi32>
    %27 = arith.cmpi ne, %25, %26 : vector<16x16xi32>
    %c0_i32_12 = arith.constant 0 : i32
    %28 = vector.broadcast %c0_i32_12 : i32 to vector<16x16xi32>
    %29 = arith.cmpi slt, %25, %28 : vector<16x16xi32>
    %c0_i32_13 = arith.constant 0 : i32
    %30 = arith.cmpi slt, %23, %c0_i32_13 : i32
    %31 = vector.broadcast %30 : i1 to vector<16x16xi1>
    %32 = vector.broadcast %31 : vector<16x16xi1> to vector<16x16xi1>
    %33 = arith.xori %29, %32 : vector<16x16xi1>
    %34 = arith.andi %33, %27 : vector<16x16xi1>
    %35 = vector.broadcast %23 : i32 to vector<16x16xi32>
    %36 = arith.addi %25, %35 : vector<16x16xi32>
    %37 = arith.select %34, %36, %25 : vector<16x16xi1>, vector<16x16xi32>
    %38 = tpu.iota {dimensions = array<i32: 1>} : vector<16x16xi32>
    %c2_i32_14 = arith.constant 2 : i32
    %c0_i32_15 = arith.constant 0 : i32
    %39 = arith.cmpi eq, %c2_i32_14, %c0_i32_15 : i32
    %c1_i32_16 = arith.constant 1 : i32
    %40 = arith.select %39, %c1_i32_16, %c2_i32_14 : i32
    %41 = vector.broadcast %40 : i32 to vector<16x16xi32>
    %42 = arith.remsi %38, %41 : vector<16x16xi32>
    %c0_i32_17 = arith.constant 0 : i32
    %43 = vector.broadcast %c0_i32_17 : i32 to vector<16x16xi32>
    %44 = arith.cmpi ne, %42, %43 : vector<16x16xi32>
    %c0_i32_18 = arith.constant 0 : i32
    %45 = vector.broadcast %c0_i32_18 : i32 to vector<16x16xi32>
    %46 = arith.cmpi slt, %42, %45 : vector<16x16xi32>
    %c0_i32_19 = arith.constant 0 : i32
    %47 = arith.cmpi slt, %40, %c0_i32_19 : i32
    %48 = vector.broadcast %47 : i1 to vector<16x16xi1>
    %49 = vector.broadcast %48 : vector<16x16xi1> to vector<16x16xi1>
    %50 = arith.xori %46, %49 : vector<16x16xi1>
    %51 = arith.andi %50, %44 : vector<16x16xi1>
    %52 = vector.broadcast %40 : i32 to vector<16x16xi32>
    %53 = arith.addi %42, %52 : vector<16x16xi32>
    %54 = arith.select %51, %53, %42 : vector<16x16xi1>, vector<16x16xi32>
    %55 = arith.cmpi eq, %37, %54 : vector<16x16xi32>
    %cst_20 = arith.constant -1.000000e+30 : f32
    %56 = vector.broadcast %cst_20 : f32 to vector<16x16xf32>
    %57 = arith.select %55, %20, %56 : vector<16x16xi1>, vector<16x16xf32>
    %cst_21 = arith.constant dense<0xFF800000> : vector<16xf32>
    %58 = vector.multi_reduction <maximumf>, %57, %cst_21 [1] : vector<16x16xf32> to vector<16xf32>
    %59 = vector.shape_cast %58 : vector<16xf32> to vector<16x1xf32>
    %60 = vector.broadcast %59 : vector<16x1xf32> to vector<16x16xf32>
    %61 = arith.subf %57, %60 : vector<16x16xf32>
    %62 = math.exp %61 : vector<16x16xf32>
    %cst_22 = arith.constant dense<0.000000e+00> : vector<16xf32>
    %63 = vector.multi_reduction <add>, %62, %cst_22 [1] : vector<16x16xf32> to vector<16xf32>
    %64 = vector.shape_cast %63 : vector<16xf32> to vector<16x1xf32>
    %65 = tpu.reciprocal %64 {approx = true} : vector<16x1xf32> -> vector<16x1xf32>
    %66 = vector.broadcast %65 : vector<16x1xf32> to vector<16x16xf32>
    %67 = arith.mulf %62, %66 : vector<16x16xf32>
    %68 = arith.truncf %67 : vector<16x16xf32> to vector<16x16xbf16>
    %cst_23 = arith.constant dense<0.000000e+00> : vector<16x32xf32>
    %69 = tpu.matmul %68, %17, %cst_23 {dimension_numbers = #tpu.dot_dimension_numbers<[1], [0], [0], [1], [0, 0, 1, 1], [], []>} : vector<16x16xbf16>, vector<16x32xbf16>, vector<16x32xf32> -> vector<16x32xf32>
    %70 = arith.truncf %69 : vector<16x32xf32> to vector<16x32xbf16>
    %c0_24 = arith.constant 0 : index
    %c0_25 = arith.constant 0 : index
    %c0_26 = arith.constant 0 : index
    %71 = vector.load %arg4[%c0_24, %c0_25, %c0_26] : memref<1x32x32xbf16, #tpu.memory_space<vmem>>, vector<1x32x32xbf16>
    %72 = vector.shape_cast %71 : vector<1x32x32xbf16> to vector<32x32xbf16>
    %cst_27 = arith.constant dense<0.000000e+00> : vector<16x32xf32>
    %73 = tpu.matmul %70, %72, %cst_27 {dimension_numbers = #tpu.dot_dimension_numbers<[1], [0], [0], [1], [0, 0, 1, 1], [], []>} : vector<16x32xbf16>, vector<32x32xbf16>, vector<16x32xf32> -> vector<16x32xf32>
    %c0_28 = arith.constant 0 : index
    %c0_29 = arith.constant 0 : index
    %c0_30 = arith.constant 0 : index
    %74 = vector.load %arg5[%c0_28, %c0_29, %c0_30] : memref<1x1x32xf32, #tpu.memory_space<vmem>>, vector<1x1x32xf32>
    %75 = vector.shape_cast %74 : vector<1x1x32xf32> to vector<1x32xf32>
    %76 = vector.broadcast %75 : vector<1x32xf32> to vector<16x32xf32>
    %77 = arith.addf %73, %76 : vector<16x32xf32>
    %78 = arith.addf %3, %77 : vector<16x32xf32>
    %c0_31 = arith.constant 0 : index
    %c0_32 = arith.constant 0 : index
    %c0_33 = arith.constant 0 : index
    %79 = vector.load %arg10[%c0_31, %c0_32, %c0_33] : memref<1x1x32xf32, #tpu.memory_space<vmem>>, vector<1x1x32xf32>
    %80 = vector.shape_cast %79 : vector<1x1x32xf32> to vector<1x32xf32>
    %c0_34 = arith.constant 0 : index
    %c0_35 = arith.constant 0 : index
    %c0_36 = arith.constant 0 : index
    %81 = vector.load %arg11[%c0_34, %c0_35, %c0_36] : memref<1x1x32xf32, #tpu.memory_space<vmem>>, vector<1x1x32xf32>
    %82 = vector.shape_cast %81 : vector<1x1x32xf32> to vector<1x32xf32>
    %cst_37 = arith.constant dense<0.000000e+00> : vector<16xf32>
    %83 = vector.multi_reduction <add>, %78, %cst_37 [1] : vector<16x32xf32> to vector<16xf32>
    %84 = vector.shape_cast %83 : vector<16xf32> to vector<16x1xf32>
    %cst_38 = arith.constant 3.200000e+01 : f32
    %85 = vector.broadcast %cst_38 : f32 to vector<16x1xf32>
    %86 = arith.divf %84, %85 : vector<16x1xf32>
    %87 = vector.broadcast %86 : vector<16x1xf32> to vector<16x32xf32>
    %88 = arith.subf %78, %87 : vector<16x32xf32>
    %89 = arith.mulf %88, %88 : vector<16x32xf32>
    %cst_39 = arith.constant dense<0.000000e+00> : vector<16xf32>
    %90 = vector.multi_reduction <add>, %89, %cst_39 [1] : vector<16x32xf32> to vector<16xf32>
    %91 = vector.shape_cast %90 : vector<16xf32> to vector<16x1xf32>
    %cst_40 = arith.constant 3.200000e+01 : f32
    %92 = vector.broadcast %cst_40 : f32 to vector<16x1xf32>
    %93 = arith.divf %91, %92 : vector<16x1xf32>
    %94 = vector.broadcast %86 : vector<16x1xf32> to vector<16x32xf32>
    %95 = arith.subf %78, %94 : vector<16x32xf32>
    %cst_41 = arith.constant 9.99999974E-6 : f32
    %96 = vector.broadcast %cst_41 : f32 to vector<16x1xf32>
    %97 = arith.addf %93, %96 : vector<16x1xf32>
    %98 = math.rsqrt %97 : vector<16x1xf32>
    %99 = vector.broadcast %98 : vector<16x1xf32> to vector<16x32xf32>
    %100 = arith.mulf %95, %99 : vector<16x32xf32>
    %101 = vector.broadcast %80 : vector<1x32xf32> to vector<16x32xf32>
    %102 = arith.mulf %100, %101 : vector<16x32xf32>
    %103 = vector.broadcast %82 : vector<1x32xf32> to vector<16x32xf32>
    %104 = arith.addf %102, %103 : vector<16x32xf32>
    %105 = arith.truncf %104 : vector<16x32xf32> to vector<16x32xbf16>
    %c0_42 = arith.constant 0 : index
    %c0_43 = arith.constant 0 : index
    %c0_44 = arith.constant 0 : index
    %106 = vector.load %arg6[%c0_42, %c0_43, %c0_44] : memref<1x32x2048xbf16, #tpu.memory_space<vmem>>, vector<1x32x2048xbf16>
    %107 = vector.shape_cast %106 : vector<1x32x2048xbf16> to vector<32x2048xbf16>
    %cst_45 = arith.constant dense<0.000000e+00> : vector<16x2048xf32>
    %108 = tpu.matmul %105, %107, %cst_45 {dimension_numbers = #tpu.dot_dimension_numbers<[1], [0], [0], [1], [0, 0, 1, 1], [], []>} : vector<16x32xbf16>, vector<32x2048xbf16>, vector<16x2048xf32> -> vector<16x2048xf32>
    %c0_46 = arith.constant 0 : index
    %c0_47 = arith.constant 0 : index
    %c0_48 = arith.constant 0 : index
    %109 = vector.load %arg7[%c0_46, %c0_47, %c0_48] : memref<1x1x2048xf32, #tpu.memory_space<vmem>>, vector<1x1x2048xf32>
    %110 = vector.shape_cast %109 : vector<1x1x2048xf32> to vector<1x2048xf32>
    %111 = vector.broadcast %110 : vector<1x2048xf32> to vector<16x2048xf32>
    %112 = arith.addf %108, %111 : vector<16x2048xf32>
    %cst_49 = arith.constant 0.000000e+00 : f32
    %113 = vector.broadcast %cst_49 : f32 to vector<16x2048xf32>
    %114 = arith.maximumf %112, %113 : vector<16x2048xf32>
    %115 = arith.truncf %114 : vector<16x2048xf32> to vector<16x2048xbf16>
    %c0_50 = arith.constant 0 : index
    %c0_51 = arith.constant 0 : index
    %c0_52 = arith.constant 0 : index
    %116 = vector.load %arg8[%c0_50, %c0_51, %c0_52] : memref<1x2048x32xbf16, #tpu.memory_space<vmem>>, vector<1x2048x32xbf16>
    %117 = vector.shape_cast %116 : vector<1x2048x32xbf16> to vector<2048x32xbf16>
    %cst_53 = arith.constant dense<0.000000e+00> : vector<16x32xf32>
    %118 = tpu.matmul %115, %117, %cst_53 {dimension_numbers = #tpu.dot_dimension_numbers<[1], [0], [0], [1], [0, 0, 1, 1], [], []>} : vector<16x2048xbf16>, vector<2048x32xbf16>, vector<16x32xf32> -> vector<16x32xf32>
    %c0_54 = arith.constant 0 : index
    %c0_55 = arith.constant 0 : index
    %c0_56 = arith.constant 0 : index
    %119 = vector.load %arg9[%c0_54, %c0_55, %c0_56] : memref<1x1x32xf32, #tpu.memory_space<vmem>>, vector<1x1x32xf32>
    %120 = vector.shape_cast %119 : vector<1x1x32xf32> to vector<1x32xf32>
    %121 = vector.broadcast %120 : vector<1x32xf32> to vector<16x32xf32>
    %122 = arith.addf %118, %121 : vector<16x32xf32>
    %123 = arith.addf %104, %122 : vector<16x32xf32>
    %c0_57 = arith.constant 0 : index
    %c0_58 = arith.constant 0 : index
    %c0_59 = arith.constant 0 : index
    %124 = vector.load %arg12[%c0_57, %c0_58, %c0_59] : memref<1x1x32xf32, #tpu.memory_space<vmem>>, vector<1x1x32xf32>
    %125 = vector.shape_cast %124 : vector<1x1x32xf32> to vector<1x32xf32>
    %c0_60 = arith.constant 0 : index
    %c0_61 = arith.constant 0 : index
    %c0_62 = arith.constant 0 : index
    %126 = vector.load %arg13[%c0_60, %c0_61, %c0_62] : memref<1x1x32xf32, #tpu.memory_space<vmem>>, vector<1x1x32xf32>
    %127 = vector.shape_cast %126 : vector<1x1x32xf32> to vector<1x32xf32>
    %cst_63 = arith.constant dense<0.000000e+00> : vector<16xf32>
    %128 = vector.multi_reduction <add>, %123, %cst_63 [1] : vector<16x32xf32> to vector<16xf32>
    %129 = vector.shape_cast %128 : vector<16xf32> to vector<16x1xf32>
    %cst_64 = arith.constant 3.200000e+01 : f32
    %130 = vector.broadcast %cst_64 : f32 to vector<16x1xf32>
    %131 = arith.divf %129, %130 : vector<16x1xf32>
    %132 = vector.broadcast %131 : vector<16x1xf32> to vector<16x32xf32>
    %133 = arith.subf %123, %132 : vector<16x32xf32>
    %134 = arith.mulf %133, %133 : vector<16x32xf32>
    %cst_65 = arith.constant dense<0.000000e+00> : vector<16xf32>
    %135 = vector.multi_reduction <add>, %134, %cst_65 [1] : vector<16x32xf32> to vector<16xf32>
    %136 = vector.shape_cast %135 : vector<16xf32> to vector<16x1xf32>
    %cst_66 = arith.constant 3.200000e+01 : f32
    %137 = vector.broadcast %cst_66 : f32 to vector<16x1xf32>
    %138 = arith.divf %136, %137 : vector<16x1xf32>
    %139 = vector.broadcast %131 : vector<16x1xf32> to vector<16x32xf32>
    %140 = arith.subf %123, %139 : vector<16x32xf32>
    %cst_67 = arith.constant 9.99999974E-6 : f32
    %141 = vector.broadcast %cst_67 : f32 to vector<16x1xf32>
    %142 = arith.addf %138, %141 : vector<16x1xf32>
    %143 = math.rsqrt %142 : vector<16x1xf32>
    %144 = vector.broadcast %143 : vector<16x1xf32> to vector<16x32xf32>
    %145 = arith.mulf %140, %144 : vector<16x32xf32>
    %146 = vector.broadcast %125 : vector<1x32xf32> to vector<16x32xf32>
    %147 = arith.mulf %145, %146 : vector<16x32xf32>
    %148 = vector.broadcast %127 : vector<1x32xf32> to vector<16x32xf32>
    %149 = arith.addf %147, %148 : vector<16x32xf32>
    %c0_68 = arith.constant 0 : index
    %c0_69 = arith.constant 0 : index
    %150 = vector.load %arg14[%c0_68, %c0_69] : memref<16x32xf32, #tpu.memory_space<vmem>>, vector<16x32xf32>
    tpu.vector_store %arg14[%c0_68, %c0_69], %149 {strides = array<i32>} : memref<16x32xf32, #tpu.memory_space<vmem>>, vector<16x32xf32>,
    return
  }
  func.func @transform_0(%arg0: i32) -> (i32, i32) {
    %c0_i32 = arith.constant 0 : i32
    %c0_i32_0 = arith.constant 0 : i32
    %c0_i32_1 = arith.constant 0 : i32
    return %c0_i32, %c0_i32_0 : i32, i32
  }
  func.func @transform_1(%arg0: i32) -> (i32, i32, i32) {
    %c0_i32 = arith.constant 0 : i32
    %c0_i32_0 = arith.constant 0 : i32
    %c0_i32_1 = arith.constant 0 : i32
    return %arg0, %c0_i32, %c0_i32_0 : i32, i32, i32
  }
  func.func @transform_2(%arg0: i32) -> (i32, i32, i32) {
    %c0_i32 = arith.constant 0 : i32
    %c0_i32_0 = arith.constant 0 : i32
    %c0_i32_1 = arith.constant 0 : i32
    return %arg0, %c0_i32, %c0_i32_0 : i32, i32, i32
  }
  func.func @transform_3(%arg0: i32) -> (i32, i32, i32) {
    %c0_i32 = arith.constant 0 : i32
    %c0_i32_0 = arith.constant 0 : i32
    %c0_i32_1 = arith.constant 0 : i32
    return %arg0, %c0_i32, %c0_i32_0 : i32, i32, i32
  }
  func.func @transform_4(%arg0: i32) -> (i32, i32, i32) {
    %c0_i32 = arith.constant 0 : i32
    %c0_i32_0 = arith.constant 0 : i32
    %c0_i32_1 = arith.constant 0 : i32
    return %arg0, %c0_i32, %c0_i32_0 : i32, i32, i32
  }
  func.func @transform_5(%arg0: i32) -> (i32, i32, i32) {
    %c0_i32 = arith.constant 0 : i32
    %c0_i32_0 = arith.constant 0 : i32
    %c0_i32_1 = arith.constant 0 : i32
    return %arg0, %c0_i32, %c0_i32_0 : i32, i32, i32
  }
  func.func @transform_6(%arg0: i32) -> (i32, i32, i32) {
    %c0_i32 = arith.constant 0 : i32
    %c0_i32_0 = arith.constant 0 : i32
    %c0_i32_1 = arith.constant 0 : i32
    return %arg0, %c0_i32, %c0_i32_0 : i32, i32, i32
  }
  func.func @transform_7(%arg0: i32) -> (i32, i32, i32) {
    %c0_i32 = arith.constant 0 : i32
    %c0_i32_0 = arith.constant 0 : i32
    %c0_i32_1 = arith.constant 0 : i32
    return %arg0, %c0_i32, %c0_i32_0 : i32, i32, i32
  }
  func.func @transform_8(%arg0: i32) -> (i32, i32, i32) {
    %c0_i32 = arith.constant 0 : i32
    %c0_i32_0 = arith.constant 0 : i32
    %c0_i32_1 = arith.constant 0 : i32
    return %arg0, %c0_i32, %c0_i32_0 : i32, i32, i32
  }
  func.func @transform_9(%arg0: i32) -> (i32, i32, i32) {
    %c0_i32 = arith.constant 0 : i32
    %c0_i32_0 = arith.constant 0 : i32
    %c0_i32_1 = arith.constant 0 : i32
    return %arg0, %c0_i32, %c0_i32_0 : i32, i32, i32
  }
  func.func @transform_10(%arg0: i32) -> (i32, i32, i32) {
    %c0_i32 = arith.constant 0 : i32
    %c0_i32_0 = arith.constant 0 : i32
    %c0_i32_1 = arith.constant 0 : i32
    return %arg0, %c0_i32, %c0_i32_0 : i32, i32, i32
  }
  func.func @transform_11(%arg0: i32) -> (i32, i32, i32) {
    %c0_i32 = arith.constant 0 : i32
    %c0_i32_0 = arith.constant 0 : i32
    %c0_i32_1 = arith.constant 0 : i32
    return %arg0, %c0_i32, %c0_i32_0 : i32, i32, i32
  }
  func.func @transform_12(%arg0: i32) -> (i32, i32, i32) {
    %c0_i32 = arith.constant 0 : i32
    %c0_i32_0 = arith.constant 0 : i32
    %c0_i32_1 = arith.constant 0 : i32
    return %arg0, %c0_i32, %c0_i32_0 : i32, i32, i32
  }
  func.func @transform_13(%arg0: i32) -> (i32, i32) {
    %c0_i32 = arith.constant 0 : i32
    %c0_i32_0 = arith.constant 0 : i32
    %c0_i32_1 = arith.constant 0 : i32
    return %c0_i32, %c0_i32_0 : i32, i32
  }
}

</mosaic_0001>

<bundles_post_ra>
// kernel: tpu_custom_call.1
= control target key start
LH: loop header
LB: loop body
LE: loop exit
PB: predicated region body
PF: predicated region fallthrough
CT: control target
= control target key end

     0   :  { %s4361_s0 = inlined_call_operand.vmem [shape: f32[16,32], index: 0, kind: input, shape index: {}]   ;;  %s4362_s1 = inlined_call_operand.vmem [shape: bf16[2,32,128], index: 1, kind: input, shape index: {}]   ;;  %s4363_s2 = inlined_call_operand.vmem [shape: f32[2,1,128], index: 2, kind: input, shape index: {}]   ;;  %s4364_s3 = inlined_call_operand.vmem [shape: bf16[2,32,32], index: 3, kind: input, shape index: {}]   ;;  %s4365_s4 = inlined_call_operand.vmem [shape: f32[2,1,32], index: 4, kind: input, shape index: {}]   ;;  %s4366_s5 = inlined_call_operand.vmem [shape: bf16[2,32,2048], index: 5, kind: input, shape index: {}]   ;;  %s4367_s6 = inlined_call_operand.vmem [shape: f32[2,1,2048], index: 6, kind: input, shape index: {}]   ;;  %s4368_s7 = inlined_call_operand.vmem [shape: bf16[2,2048,32], index: 7, kind: input, shape index: {}]   ;;  %s4369_s8 = inlined_call_operand.vmem [shape: f32[2,1,32], index: 8, kind: input, shape index: {}]   ;;  %s4370_s9 = inlined_call_operand.vmem [shape: f32[2,1,32], index: 9, kind: input, shape index: {}]   ;;  %s4371_s10 = inlined_call_operand.vmem [shape: f32[2,1,32], index: 10, kind: input, shape index: {}]   ;;  %s4372_s11 = inlined_call_operand.vmem [shape: f32[2,1,32], index: 11, kind: input, shape index: {}]   ;;  %s4373_s12 = inlined_call_operand.vmem [shape: f32[2,1,32], index: 12, kind: input, shape index: {}]   ;;  %s4374_s13 = inlined_call_operand.hbm [shape: f32[16,32], index: 13, kind: output, shape index: {}]  }
   0x1   :  { %4378 = sst [smem:[#allocation6_spill]] %s4361_s0 }
   0x2   :  { %4379 = sst [smem:[#allocation7_spill]] %s4362_s1 }
   0x3   :  { %4380 = sst [smem:[#allocation8_spill]] %s4364_s3 }
   0x4   :  { %4381 = sst [smem:[#allocation9_spill]] %s4366_s5 }
   0x5   :  { %4382 = sst [smem:[#allocation10_spill]] %s4367_s6 }
   0x6   :  { %4383 = sst [smem:[#allocation11_spill]] %s4374_s13 }
   0x7   :  { %18 = vsyncpa [#allocation3], 0  ;;  %s3910_s25 = smov 0  }
   0x8 LB: > { %4384 = sst [smem:[#allocation5_spill]] %s3830_s25  ;;  %s3916_s26 = sadd.s32 4294967295, %s3830_s25   ;;  %s3830_s25 = sphi %s3910_s25, %s24_s25  }
   0x9   : > { %p3208_p0 = scmp.ge.s32.totalorder %s3830_s25, 1  ;;  %p478_p1 = scmp.lt.s32.totalorder %s3830_s25, 3 }
   0xb   : > { %p479_p2 = pnand %p3208_p0, %p478_p1 }
   0xc   : > { %p557_p3 = scmp.lt.s32.totalorder (!%p479_p2), %s3916_s26, 1  ;;  %s4385_s1 = sld [smem:[#allocation7_spill]] (!%p479_p2) }
   0xd   : > { %482 = sbr.rel (%p479_p2) target bundleno = 2551 (0x9f7), region = 72  ;;  %s4386_s3 = sld [smem:[#allocation8_spill]] (!%p479_p2) }
   0xe   : > { %s4387_s5 = sld [smem:[#allocation9_spill]] (!%p479_p2)  ;;  %s4388_s6 = sld [smem:[#allocation10_spill]] (!%p479_p2) }
   0xf   : > { %p3218_p4 = scmp.ne.s32.totalorder (!%p479_p2), %s3916_s26, 0 }
  0x14   : > { %s3922_s27 = scalar_select %p557_p3, %s3916_s26, 1 }
  0x15   : > { %vm609_vm0 = vcmask (!%p3218_p4), 261120  }
  0x16   : > { %s3406_s28 = sshll.u32 %s3922_s27, 4  ;;  %s3408_s24 = sshll.u32 %s3922_s27, 8 }
  0x17   : > { %s561_s17 = scalar_lea.vmem %s4385_s1, %s3406_s28  ;;  %s3935_s20 = scalar_lea.vmem %s4386_s3, %s3406_s28 }
  0x18   : > { %s3945_s0 = scalar_lea.vmem %s4387_s5, %s3408_s24  ;;  %s3950_s15 = scalar_lea.vmem %s4388_s6, %s3406_s28 }
  0x19   : > { %s3409_s16 = sshll.u32 %s3922_s27, 10  ;;  %s589_s19 = scalar_lea.vmem %s4369_s8, %s3922_s27 }
  0x1a   : > { %s3960_s21 = scalar_lea.vmem %s4368_s7, %s3409_s16  ;;  %s592_s13 = scalar_lea.vmem %s4370_s9, %s3922_s27 }
  0x1b   : > { %s595_s29 = scalar_lea.vmem %s4371_s10, %s3922_s27  ;;  %s598_s5 = scalar_lea.vmem %s4372_s11, %s3922_s27 }
  0x1c   : > { %s601_s18 = scalar_lea.vmem %s4373_s12, %s3922_s27  ;;  %606 = sbr.rel (%p3218_p4) target bundleno = 37 (0x25), region = 76 }
  0x1d   : > { %s4389_s16 = sld [smem:[#allocation6_spill]] (!%p3218_p4) }
  0x23   : > { %v607_v0 = vld [vmem:[%s4389_s16] sm:$0xff]  ;;  %v608_v1 = vld [vmem:[%s4389_s16 + $0x8] sm:$0xff] }
  0x24   : > { %610 = vst.msk [vmem:[#allocation2] sm:$0xff] %vm609_vm0, %v607_v0  ;;  %611 = vst.msk [vmem:[#allocation2 + $0x8] sm:$0xff] %vm609_vm0, %v608_v1 }
  0x25 PF: > { %v3646_v2 = vld [vmem:[%s561_s17] sm:$0xff]   ;;  %v3832_v3 = vmov 0.0   ;;  %v3647_v4 = vld [vmem:[%s561_s17 + $0x8] sm:$0xff]   ;;  %vm3833_vm1 = vmmov 0   ;;  %vm638_vm2 = vcmask 261120   ;;  %s4390_s25 = scalar_lea.vmem %s4363_s2, %s3922_s27  ;;  %s3834_s24 = smov 96   ;;  %v736_v18 = vlaneseq }
  0x26   : > { %3596 = vmatprep.subr.bf16.mxu0 %v3832_v3  ;;  %3604 = vmatprep.subr.bf16.mxu1 %v3832_v3  ;;  %v3219_v8 = vld [vmem:[%s4390_s25] ss:$0 sm:$0xff]  ;;  %vm781_vm4 = vcmask 130048   ;;  %s3835_s28 = smov 64   ;;  %v3649_v54 = vld [vmem:[%s3935_s20 + $0x8] sm:$0xff]   ;;  %s4391_s1 = scalar_lea.vmem %s4365_s4, %s3922_s27 }
  0x27   : > { %3597 = vmatpush3.bf16.msra.mxu0 %v3646_v2  ;;  %3600 = vmatprep.mubr.msk.bf16.mxu0 %vm3833_vm1, %v3832_v3  ;;  %v4012_v19 = vshrl.u32 %v736_v18, 7  ;;  %v764_v20 = vand.u32 127, %v736_v18  ;;  %v3648_v45 = vld [vmem:[%s3935_s20] sm:$0xff]   ;;  %s3837_s6 = smov [#allocation2]   ;;  %p3628_p5 = scmp.eq.s32.totalorder %s3916_s26, 1 }
  0x28   : > { %3598 = vmatprep.subr.bf16.mxu0 %v3832_v3  ;;  %3606 = vmatprep.mubr.msk.bf16.mxu1 %vm3833_vm1, %v3832_v3  ;;  %v3225_v60 = vld [vmem:[%s4391_s1] ss:$0 sm:$0xff]  ;;  %s3052_s17 = sshll.u32 %s3837_s6, 4  ;;  %s3053_s17 = int_to_ptr.vmem [resolvable:$true] %s3052_s17 }
  0x29   : > { %v738_v21 = vadd.s32 8, %v4012_v19  ;;  %v743_v22 = vand.u32 1, %v4012_v19  ;;  %v769_v23 = vand.u32 1, %v764_v20  ;;  %v976_v18 = vld [vmem:[%s3945_s0 + $0x40] sm:$0xff]  ;;  %v969_v20 = vld [vmem:[%s3945_s0 + $0x8] sm:$0xff]  ;;  %p3801_p9 = scmp.lt.s32.totalorder %s3053_s17, %s3053_s17 }
  0x2b   : > { %v3989_v5 = vld [vmem:[#allocation2] sm:$0xff]  ;;  %v3991_v6 = vld [vmem:[#allocation2 + $0x8] sm:$0xff]  ;;  %3599 = vmatpush3.bf16.msra.mxu0 %v3647_v4  ;;  %v750_v24 = vand.u32 1, %v738_v21  ;;  %vm777_vm3 = vcmp.eq.s32.totalorder %v743_v22, %v769_v23 }
  0x2c   : > { %v614_v7 = vpack.c.bf16 %v3991_v6, %v3989_v5  ;;  %3610 = vmatprep.subr.bf16.mxu0 %v3832_v3  ;;  %v977_v22 = vld [vmem:[%s3945_s0 + $0x48] sm:$0xff] }
  0x2d   : > { %vm778_vm5 = vcmp.eq.s32.totalorder %v750_v24, %v769_v23  ;;  %v3233_v24 = vcombine.low %v969_v20, %v977_v22 }
  0x2e   : > { %3601 = vmatmul.mubr.msk.bf16.vlgmr.msra.gmra.mrb[0].mxu0 %vm638_vm2, %v614_v7 }
  0x2f   : > { %3612 = vmatprep.mubr.msk.bf16.mxu0 %vm3833_vm1, %v3832_v3 }
 0x101   : > { %v676_v9 = vpop.f32.mrb[0].mxu0 }
 0x102   : > { %v3602_v10 = vpop.f32.mrb[1].mxu0  ;;  %v677_v12 = vadd.f32 %v3219_v8, %v676_v9 }
 0x103   : > { %v679_v11 = vpop.f32.mrb[2].mxu0 }
 0x104   : > { %v680_v13 = vadd.f32 %v3219_v8, %v679_v11  ;;  %v3603_v14 = vpop.f32.mrb[3].mxu0 }
 0x106   : > { %v683_v15 = vpack.c.bf16 %v680_v13, %v677_v12 }
 0x108   : > { %685 = vrot.lane.b32.xlu0 %v683_v15, %s3834_s24 }
 0x17a   : > { %v686_v16 = vpop.permute.xlu0 %685 }
 0x17b   : > { %v691_v17 = vsel %vm638_vm2, %v686_v16, 0 }
 0x17c   : > { %3605 = vmatpush3.bf16.xpose.msra.mxu1 %v691_v17  ;;  %v968_v17 = vld [vmem:[%s3945_s0] sm:$0xff] }
 0x17d   : > { %3616 = vmatprep.subr.bf16.mxu1 %v3832_v3  ;;  %v3232_v21 = vcombine.high %v968_v17, %v976_v18  ;;  %v3231_v23 = vcombine.low %v968_v17, %v976_v18  ;;  %v974_v18 = vld [vmem:[%s3945_s0 + $0x30] sm:$0xff] }
 0x183   : > { %3607 = vmatmul.mubr.msk.bf16.vlgmr.msra.gmra.mrb[0].mxu1 %vm638_vm2, %v683_v15 }
 0x184   : > { %3620 = vmatprep.mubr.msk.bf16.mxu1 %vm3833_vm1, %v3832_v3  ;;  %3617 = vmatpush3.bf16.msra.mxu1 %v3648_v45 }
 0x185   : > { %3618 = vmatprep.subr.bf16.mxu1 %v3832_v3 }
 0x188   : > { %3619 = vmatpush3.bf16.msra.mxu1 %v3649_v54 }
 0x256   : > { %v727_v25 = vpop.f32.mrb[0].mxu1 }
 0x257   : > { %v734_v26 = vmul.f32 0.17677669, %v727_v25  ;;  %v3608_v27 = vpop.f32.mrb[1].mxu1  ;;  %v3234_v25 = vcombine.high %v969_v20, %v977_v22  ;;  %v982_v20 = vld [vmem:[%s3945_s0 + $0x70] sm:$0xff]  ;;  %v983_v22 = vld [vmem:[%s3945_s0 + $0x78] sm:$0xff] }
 0x258   : > { %v730_v28 = vpop.f32.mrb[2].mxu1  ;;  %v992_v27 = vld [vmem:[%s3945_s0 + $0xc0] sm:$0xff] }
 0x259   : > { %v735_v29 = vmul.f32 0.17677669, %v730_v28  ;;  %v3609_v30 = vpop.f32.mrb[3].mxu1  ;;  %v779_v31 = vsel %vm777_vm3, %v734_v26, -1e+30  ;;  %1290 = vmatprep.subr.bf16.mxu1 %v3234_v25  ;;  %v984_v26 = vld [vmem:[%s3945_s0 + $0x80] sm:$0xff]  ;;  %v3244_v25 = vcombine.high %v974_v18, %v982_v20 }
 0x25a   : > { %v782_v32 = vsel %vm781_vm4, %v779_v31, -inf  ;;  %v985_v28 = vld [vmem:[%s3945_s0 + $0x88] sm:$0xff] }
 0x25b   : > { %783 = vmax.xlane.f32.xlu0 %v782_v32  ;;  %v780_v33 = vsel %vm778_vm5, %v735_v29, -1e+30  ;;  %v3248_v29 = vcombine.high %v984_v26, %v992_v27  ;;  %v993_v30 = vld [vmem:[%s3945_s0 + $0xc8] sm:$0xff] }
 0x25c   : > { %v785_v34 = vsel %vm781_vm4, %v780_v33, -inf  ;;  %v3249_v32 = vcombine.low %v985_v28, %v993_v30 }
 0x25d   : > { %786 = vmax.xlane.f32.xlu1 %v785_v34  ;;  %v970_v34 = vld [vmem:[%s3945_s0 + $0x10] sm:$0xff] }
 0x2e8   : > { %v784_v35 = vpop.xlane.xlu0 %783 }
 0x2e9   : > { %v788_v36 = vsub.f32 %v779_v31, %v784_v35  ;;  %v3247_v31 = vcombine.low %v984_v26, %v992_v27  ;;  %v978_v35 = vld [vmem:[%s3945_s0 + $0x50] sm:$0xff] }
 0x2ea   : > { %v787_v37 = vpop.xlane.xlu1 %786  ;;  %v990_v27 = vld [vmem:[%s3945_s0 + $0xb0] sm:$0xff] }
 0x2eb   : > { %v790_v38 = vmul.f32 1.442695, %v788_v36  ;;  %v789_v39 = vsub.f32 %v780_v33, %v787_v37  ;;  %v3250_v33 = vcombine.high %v985_v28, %v993_v30  ;;  %v971_v36 = vld [vmem:[%s3945_s0 + $0x18] sm:$0xff]  ;;  %v3236_v37 = vcombine.high %v970_v34, %v978_v35  ;;  %v998_v28 = vld [vmem:[%s3945_s0 + $0xf0] sm:$0xff] }
 0x2ec   : > { %v999_v30 = vld [vmem:[%s3945_s0 + $0xf8] sm:$0xff] }
 0x2ed   : > { %3778 = vpow2.f32 %v790_v38  ;;  %v792_v40 = vmul.f32 1.442695, %v789_v39  ;;  %v979_v38 = vld [vmem:[%s3945_s0 + $0x58] sm:$0xff]  ;;  %v3836_v39 = vmov 0  }
 0x2ef   : > { %3780 = vpow2.f32 %v792_v40  ;;  %v3235_v40 = vcombine.low %v970_v34, %v978_v35  ;;  %v3259_v35 = vcombine.low %v990_v27, %v998_v28 }
 0x2f7   : > { %v3779_v41 = vpop.eup %3778 }
 0x2f8   : > { %v794_v42 = vsel %vm781_vm4, %v3779_v41, 0.0 }
 0x2f9   : > { %v3781_v43 = vpop.eup %3780  ;;  %795 = vadd.xlane.f32.xlu1 %v794_v42  ;;  %v3238_v42 = vcombine.high %v971_v36, %v979_v38 }
 0x2fa   : > { %v797_v44 = vsel %vm781_vm4, %v3781_v43, 0.0 }
 0x2fd   : > { %798 = vadd.xlane.f32.xlu1 %v797_v44 }
 0x30e   : > { %805 = vrot.lane.b32.xlu1 %v683_v15, %s3835_s28 }
 0x386   : > { %v796_v46 = vpop.xlane.xlu1 %795 }
 0x387   : > { %3782 = vrcp.f32 %v796_v46 }
 0x38a   : > { %v799_v47 = vpop.xlane.xlu1 %798 }
 0x38b   : > { %3784 = vrcp.f32 %v799_v47 }
 0x38e   : > { %v806_v48 = vpop.permute.xlu1 %805 }
 0x38f   : > { %3611 = vmatpush3.bf16.msra.mxu0 %v806_v48 }
 0x390   : > { %1247 = vmatprep.subr.bf16.mxu0 %v3232_v21  ;;  %v975_v21 = vld [vmem:[%s3945_s0 + $0x38] sm:$0xff] }
 0x391   : > { %v3783_v49 = vpop.eup %3782  ;;  %v3246_v26 = vcombine.high %v975_v21, %v983_v22 }
 0x392   : > { %v802_v51 = vmul.f32 %v3783_v49, %v3779_v41  ;;  %v3237_v41 = vcombine.low %v971_v36, %v979_v38  ;;  %v3651_v38 = vld [vmem:[%s3960_s21 + $0xc0] sm:$0xff]  }
 0x395   : > { %v3785_v50 = vpop.eup %3784 }
 0x396   : > { %v803_v52 = vmul.f32 %v3785_v50, %v3781_v43 }
 0x398   : > { %v804_v53 = vpack.c.bf16 %v803_v52, %v802_v51  ;;  %v3229_v51 = vld [vmem:[%s592_s13] ss:$0 sm:$0xff] }
 0x39a   : > { %3613 = vmatmul.mubr.msk.bf16.vlgmr.msra.gmra.mrb[4].mxu0 %vm781_vm4, %v804_v53 }
 0x39b   : > { %1248 = vmatpush1.bf16.msra.mxu0 %v3231_v23  ;;  %1279 = vmatprep.mubr.bf16.mxu0 %v3836_v39 }
 0x39c   : > { %1249 = vmatprep.subr.bf16.mxu0 %v3248_v29  ;;  %v991_v29 = vld [vmem:[%s3945_s0 + $0xb8] sm:$0xff] }
 0x39d   : > { %v3262_v34 = vcombine.high %v991_v29, %v999_v30  ;;  %v3261_v36 = vcombine.low %v991_v29, %v999_v30 }
 0x39f   : > { %1250 = vmatpush1.bf16.msra.mxu0 %v3247_v31  ;;  %v3243_v31 = vcombine.low %v974_v18, %v982_v20 }
 0x3a0   : > { %1333 = vmatprep.subr.bf16.mxu0 %v3236_v37  ;;  %v3650_v37 = vld [vmem:[%s3960_s21 + $0x40] sm:$0xff]  }
 0x46d   : > { %v845_v55 = vpop.f32.mrb[4].mxu0 }
 0x46e   : > { %v3614_v56 = vpop.f32.mrb[5].mxu0 }
 0x46f   : > { %v848_v57 = vpop.f32.mrb[6].mxu0 }
 0x470   : > { %v852_v58 = vpack.c.bf16 %v848_v57, %v845_v55  ;;  %v3615_v59 = vpop.f32.mrb[7].mxu0  ;;  %v3230_v55 = vld [vmem:[%s595_s29] ss:$0 sm:$0xff]  ;;  %v986_v57 = vld [vmem:[%s3945_s0 + $0x90] sm:$0xff] }
 0x471   : > { %v987_v59 = vld [vmem:[%s3945_s0 + $0x98] sm:$0xff] }
 0x472   : > { %3621 = vmatmul.mubr.msk.bf16.vlgmr.msra.gmra.mrb[4].mxu1 %vm638_vm2, %v852_v58  ;;  %v994_v58 = vld [vmem:[%s3945_s0 + $0xd0] sm:$0xff] }
 0x473   : > { %1291 = vmatpush1.bf16.msra.mxu1 %v3233_v24  ;;  %1322 = vmatprep.mubr.bf16.mxu1 %v3836_v39 }
 0x474   : > { %1292 = vmatprep.subr.bf16.mxu1 %v3250_v33  ;;  %v3260_v33 = vcombine.high %v990_v27, %v998_v28 }
 0x477   : > { %1293 = vmatpush1.bf16.msra.mxu1 %v3249_v32  ;;  %v3245_v32 = vcombine.low %v975_v21, %v983_v22  ;;  %v1022_v22 = vsub.s32 4, %v4012_v19 }
 0x478   : > { %1376 = vmatprep.subr.bf16.mxu1 %v3238_v42  ;;  %v3654_v42 = vld [vmem:[%s3960_s21 + $0x48] sm:$0xff]  }
 0x545   : > { %v913_v61 = vpop.f32.mrb[4].mxu1 }
 0x546   : > { %v914_v62 = vadd.f32 %v3225_v60, %v913_v61  ;;  %v3622_v63 = vpop.f32.mrb[5].mxu1 }
 0x547   : > { %v916_v0 = vpop.f32.mrb[6].mxu1 }
 0x548   : > { %v917_v1 = vadd.f32 %v3225_v60, %v916_v0  ;;  %v3623_v2 = vpop.f32.mrb[7].mxu1  ;;  %v920_v3 = vadd.f32 %v914_v62, %v3989_v5  ;;  %v995_v60 = vld [vmem:[%s3945_s0 + $0xd8] sm:$0xff]  ;;  %v3252_v0 = vcombine.high %v986_v57, %v994_v58 }
 0x549   : > { %v972_v2 = vld [vmem:[%s3945_s0 + $0x20] sm:$0xff] }
 0x54a   : > { %v924_v4 = vsel %vm638_vm2, %v920_v3, 0.0  ;;  %v921_v7 = vadd.f32 %v917_v1, %v3991_v6  ;;  %v3254_v1 = vcombine.high %v987_v59, %v995_v60 }
 0x54b   : > { %925 = vadd.xlane.f32.xlu1 %v924_v4  ;;  %v973_v4 = vld [vmem:[%s3945_s0 + $0x28] sm:$0xff] }
 0x54c   : > { %v927_v8 = vsel %vm638_vm2, %v921_v7, 0.0 }
 0x54d   : > { %928 = vadd.xlane.f32.xlu0 %v927_v8  ;;  %v3251_v8 = vcombine.low %v986_v57, %v994_v58  ;;  %v3670_v57 = vld [vmem:[%s3960_s21 + $0x68] sm:$0xff]  }
 0x54e   : > { %v3671_v58 = vld [vmem:[%s3960_s21 + $0xe8] sm:$0xff]  }
 0x5d8   : > { %v926_v9 = vpop.xlane.xlu1 %925 }
 0x5d9   : > { %v931_v10 = vmul.f32 0.03125, %v926_v9  ;;  %v3253_v9 = vcombine.low %v987_v59, %v995_v60  ;;  %v3672_v59 = vld [vmem:[%s3960_s21 + $0x28] sm:$0xff]  }
 0x5da   : > { %v929_v11 = vpop.xlane.xlu0 %928  ;;  %v3673_v60 = vld [vmem:[%s3960_s21 + $0xa8] sm:$0xff]  }
 0x5db   : > { %v933_v12 = vsub.f32 %v920_v3, %v931_v10  ;;  %v932_v13 = vmul.f32 0.03125, %v929_v11  ;;  %v980_v3 = vld [vmem:[%s3945_s0 + $0x60] sm:$0xff] }
 0x5dc   : > { %v3240_v10 = vcombine.high %v972_v2, %v980_v3 }
 0x5dd   : > { %v934_v14 = vsub.f32 %v921_v7, %v932_v13  ;;  %v935_v15 = vmul.f32 %v933_v12, %v933_v12  ;;  %v981_v7 = vld [vmem:[%s3945_s0 + $0x68] sm:$0xff]  ;;  %v996_v13 = vld [vmem:[%s3945_s0 + $0xe0] sm:$0xff] }
 0x5de   : > { %v3242_v11 = vcombine.high %v973_v4, %v981_v7 }
 0x5df   : > { %v937_v5 = vsel %vm638_vm2, %v935_v15, 0.0  ;;  %v936_v16 = vmul.f32 %v934_v14, %v934_v14  ;;  %v997_v15 = vld [vmem:[%s3945_s0 + $0xe8] sm:$0xff] }
 0x5e0   : > { %938 = vadd.xlane.f32.xlu0 %v937_v5  ;;  %v3239_v5 = vcombine.low %v972_v2, %v980_v3  ;;  %v3677_v2 = vld [vmem:[%s3960_s21 + $0xb0] sm:$0xff]   ;;  %v3678_v3 = vld [vmem:[%s3960_s21 + $0x78] sm:$0xff]  }
 0x5e1   : > { %v940_v6 = vsel %vm638_vm2, %v936_v16, 0.0  ;;  %v3241_v16 = vcombine.low %v973_v4, %v981_v7  ;;  %v3679_v4 = vld [vmem:[%s3960_s21 + $0xf8] sm:$0xff]  }
 0x5e2   : > { %v3680_v7 = vld [vmem:[%s3960_s21 + $0x38] sm:$0xff]  }
 0x5e4   : > { %941 = vadd.xlane.f32.xlu0 %v940_v6 }
 0x66d   : > { %v939_v43 = vpop.xlane.xlu0 %938 }
 0x66e   : > { %v943_v44 = vmul.f32 0.03125, %v939_v43  ;;  %v3655_v43 = vld [vmem:[%s3960_s21 + $0xc8] sm:$0xff]  }
 0x670   : > { %v945_v45 = vadd.f32 1e-05, %v943_v44  ;;  %v3657_v44 = vld [vmem:[%s3960_s21 + $0x88] sm:$0xff]  }
 0x671   : > { %v942_v46 = vpop.xlane.xlu0 %941 }
 0x672   : > { %3786 = vrsqrt.f32 %v945_v45  ;;  %v944_v47 = vmul.f32 0.03125, %v942_v46  ;;  %v3658_v45 = vld [vmem:[%s3960_s21 + $0x50] sm:$0xff]  }
 0x673   : > { %v3659_v46 = vld [vmem:[%s3960_s21 + $0xd0] sm:$0xff]  }
 0x674   : > { %v946_v48 = vadd.f32 1e-05, %v944_v47  ;;  %v3660_v47 = vld [vmem:[%s3960_s21 + $0x10] sm:$0xff]  }
 0x676   : > { %3788 = vrsqrt.f32 %v946_v48  ;;  %v3661_v48 = vld [vmem:[%s3960_s21 + $0x90] sm:$0xff]  }
 0x67c   : > { %v3787_v49 = vpop.eup %3786 }
 0x67d   : > { %v949_v50 = vmul.f32 %v3787_v49, %v933_v12  ;;  %v988_v12 = vld [vmem:[%s3945_s0 + $0xa0] sm:$0xff]  ;;  %v3662_v49 = vld [vmem:[%s3960_s21 + $0x58] sm:$0xff]  }
 0x67e   : > { %v3256_v6 = vcombine.high %v988_v12, %v996_v13  ;;  %v3255_v23 = vcombine.low %v988_v12, %v996_v13  ;;  %v4146_v12 = vld [vmem:[%s3950_s15 + $0x8] sm:$0xff] }
 0x67f   : > { %v957_v53 = vmul.f32 %v3229_v51, %v949_v50  ;;  %v3663_v50 = vld [vmem:[%s3960_s21 + $0xd8] sm:$0xff]  }
 0x680   : > { %v3789_v52 = vpop.eup %3788 }
 0x681   : > { %v950_v54 = vmul.f32 %v3789_v52, %v934_v14  ;;  %v4064_v61 = vadd.f32 %v3230_v55, %v957_v53  ;;  %v989_v14 = vld [vmem:[%s3945_s0 + $0xa8] sm:$0xff]  ;;  %v3665_v52 = vld [vmem:[%s3960_s21 + $0x98] sm:$0xff]   ;;  %v3666_v53 = vld [vmem:[%s3960_s21 + $0x60] sm:$0xff]  }
 0x682   : > { %v3258_v17 = vcombine.high %v989_v14, %v997_v15  ;;  %v3257_v24 = vcombine.low %v989_v14, %v997_v15  ;;  %v1006_v14 = vsub.s32 0, %v4012_v19  ;;  %v1014_v15 = vsub.s32 2, %v4012_v19 }
 0x683   : > { %v958_v56 = vmul.f32 %v3229_v51, %v950_v54  ;;  %v3664_v51 = vld [vmem:[%s3960_s21 + $0x18] sm:$0xff]   ;;  %v3667_v54 = vld [vmem:[%s3960_s21 + $0xe0] sm:$0xff]  }
 0x685   : > { %v4066_v62 = vadd.f32 %v3230_v55, %v958_v56  ;;  %v3668_v55 = vld [vmem:[%s3960_s21 + $0x20] sm:$0xff]  }
 0x686   : > { %v3669_v56 = vld [vmem:[%s3960_s21 + $0xa0] sm:$0xff]  }
 0x687   : > { %v4070_v63 = vpack.c.bf16 %v4066_v62, %v4064_v61 }
 0x689   : > { %3263 = vmatmul.mubr.msk.bf16.vlgmr.msra.gmra.mrb[8].mxu0 %vm638_vm2, %v4070_v63  ;;  %3264 = vmatmul.mubr.msk.bf16.vlgmr.msra.gmra.mrb[8].mxu1 %vm638_vm2, %v4070_v63 }
 0x68a   : > { %1334 = vmatpush1.bf16.msra.mxu0 %v3235_v40  ;;  %1377 = vmatpush1.bf16.msra.mxu1 %v3237_v41  ;;  %v3652_v40 = vld [vmem:[%s3960_s21] sm:$0xff]  }
 0x68b   : > { %1335 = vmatprep.subr.bf16.mxu0 %v3252_v0  ;;  %1378 = vmatprep.subr.bf16.mxu1 %v3254_v1  ;;  %v3653_v41 = vld [vmem:[%s3960_s21 + $0x80] sm:$0xff]   ;;  %v3675_v0 = vld [vmem:[%s3960_s21 + $0xf0] sm:$0xff]  }
 0x68c   : > { %1365 = vmatprep.mubr.bf16.mxu0 %v3836_v39  ;;  %1408 = vmatprep.mubr.bf16.mxu1 %v3836_v39  ;;  %v3676_v1 = vld [vmem:[%s3960_s21 + $0x30] sm:$0xff]  }
 0x68e   : > { %1336 = vmatpush1.bf16.msra.mxu0 %v3251_v8  ;;  %1379 = vmatpush1.bf16.msra.mxu1 %v3253_v9  ;;  %v3681_v8 = vld [vmem:[%s3960_s21 + $0xb8] sm:$0xff]   ;;  %v3682_v9 = vld [vmem:[%s3960_s21 + $0x140] sm:$0xff]  }
 0x68f   : > { %1419 = vmatprep.subr.bf16.mxu0 %v3240_v10  ;;  %1462 = vmatprep.subr.bf16.mxu1 %v3242_v11  ;;  %v3683_v10 = vld [vmem:[%s3960_s21 + $0x1c0] sm:$0xff]   ;;  %v1030_v11 = vsub.s32 6, %v4012_v19 }
 0x691   : > { %3265 = vmatmul.mubr.msk.bf16.vlgmr.msra.gmra.mrb[12].mxu0 %vm638_vm2, %v4070_v63  ;;  %3266 = vmatmul.mubr.msk.bf16.vlgmr.msra.gmra.mrb[12].mxu1 %vm638_vm2, %v4070_v63  ;;  %v4149_v13 = vrot.slane %v4146_v12, %v1030_v11 }
 0x692   : > { %1420 = vmatpush1.bf16.msra.mxu0 %v3239_v5  ;;  %1463 = vmatpush1.bf16.msra.mxu1 %v3241_v16  ;;  %v1000_v5 = vld [vmem:[%s3950_s15] sm:$0xff]  ;;  %v1010_v16 = vsub.s32 1, %v4012_v19 }
 0x693   : > { %1421 = vmatprep.subr.bf16.mxu0 %v3256_v6  ;;  %1464 = vmatprep.subr.bf16.mxu1 %v3258_v17  ;;  %v1018_v6 = vsub.s32 3, %v4012_v19  ;;  %v1007_v17 = vrot.slane %v1000_v5, %v1006_v14  ;;  %v1015_v18 = vrot.slane %v1000_v5, %v1014_v15 }
 0x694   : > { %1451 = vmatprep.mubr.bf16.mxu0 %v3836_v39  ;;  %1494 = vmatprep.mubr.bf16.mxu1 %v3836_v39  ;;  %v1011_v20 = vrot.slane %v1000_v5, %v1010_v16 }
 0x695   : > { %v1019_v21 = vrot.slane %v1000_v5, %v1018_v6 }
 0x696   : > { %1422 = vmatpush1.bf16.msra.mxu0 %v3255_v23  ;;  %1465 = vmatpush1.bf16.msra.mxu1 %v3257_v24 }
 0x697   : > { %1505 = vmatprep.subr.bf16.mxu0 %v3244_v25  ;;  %1548 = vmatprep.subr.bf16.mxu1 %v3246_v26  ;;  %v1026_v25 = vsub.s32 5, %v4012_v19  ;;  %v1034_v26 = vsub.s32 7, %v4012_v19 }
 0x699   : > { %3267 = vmatmul.mubr.msk.bf16.vlgmr.msra.gmra.mrb[16].mxu0 %vm638_vm2, %v4070_v63  ;;  %3268 = vmatmul.mubr.msk.bf16.vlgmr.msra.gmra.mrb[16].mxu1 %vm638_vm2, %v4070_v63 }
 0x69a   : > { %1506 = vmatpush1.bf16.msra.mxu0 %v3243_v31  ;;  %1549 = vmatpush1.bf16.msra.mxu1 %v3245_v32 }
 0x69b   : > { %1507 = vmatprep.subr.bf16.mxu0 %v3260_v33  ;;  %1550 = vmatprep.subr.bf16.mxu1 %v3262_v34 }
 0x69c   : > { %1537 = vmatprep.mubr.bf16.mxu0 %v3836_v39  ;;  %1580 = vmatprep.mubr.bf16.mxu1 %v3836_v39  ;;  %v3656_v39 = vld [vmem:[%s3960_s21 + $0x8] sm:$0xff]  }
 0x69e   : > { %1508 = vmatpush1.bf16.msra.mxu0 %v3259_v35  ;;  %1551 = vmatpush1.bf16.msra.mxu1 %v3261_v36 }
 0x69f   : > { %3420 = vmatprep.subr.bf16.mxu0 %v3650_v37  ;;  %3442 = vmatprep.subr.bf16.mxu1 %v3651_v38 }
 0x6a1   : > { %3269 = vmatmul.mubr.msk.bf16.vlgmr.msra.gmra.mrb[20].mxu0 %vm638_vm2, %v4070_v63  ;;  %3270 = vmatmul.mubr.msk.bf16.vlgmr.msra.gmra.mrb[20].mxu1 %vm638_vm2, %v4070_v63  ;;  %v3674_v63 = vld [vmem:[%s3960_s21 + $0x70] sm:$0xff]  }
 0x6a2   : > { %3421 = vmatpush3.bf16.msra.mxu0 %v3652_v40  ;;  %3443 = vmatpush3.bf16.msra.mxu1 %v3653_v41  ;;  %v1023_v40 = vrot.slane %v1000_v5, %v1022_v22  ;;  %v1031_v41 = vrot.slane %v1000_v5, %v1030_v11 }
 0x6a3   : > { %3422 = vmatprep.subr.bf16.mxu0 %v3654_v42  ;;  %3444 = vmatprep.subr.bf16.mxu1 %v3655_v43 }
 0x6a6   : > { %3423 = vmatpush3.bf16.msra.mxu0 %v3656_v39  ;;  %3445 = vmatpush3.bf16.msra.mxu1 %v3657_v44  ;;  %v1027_v39 = vrot.slane %v1000_v5, %v1026_v25  ;;  %v1035_v44 = vrot.slane %v1000_v5, %v1034_v26  ;;  %v1047_v5 = vrot.slane %v4146_v12, %v1014_v15 }
 0x6a7   : > { %3424 = vmatprep.subr.bf16.mxu0 %v3658_v45  ;;  %3446 = vmatprep.subr.bf16.mxu1 %v3659_v46  ;;  %v1051_v15 = vrot.slane %v4146_v12, %v1018_v6 }
 0x6aa   : > { %3425 = vmatpush3.bf16.msra.mxu0 %v3660_v47  ;;  %3447 = vmatpush3.bf16.msra.mxu1 %v3661_v48 }
 0x6ab   : > { %3426 = vmatprep.subr.bf16.mxu0 %v3662_v49  ;;  %3448 = vmatprep.subr.bf16.mxu1 %v3663_v50 }
 0x6ae   : > { %3427 = vmatpush3.bf16.msra.mxu0 %v3664_v51  ;;  %3449 = vmatpush3.bf16.msra.mxu1 %v3665_v52 }
 0x6af   : > { %3428 = vmatprep.subr.bf16.mxu0 %v3666_v53  ;;  %3450 = vmatprep.subr.bf16.mxu1 %v3667_v54 }
 0x6b2   : > { %3429 = vmatpush3.bf16.msra.mxu0 %v3668_v55  ;;  %3451 = vmatpush3.bf16.msra.mxu1 %v3669_v56 }
 0x6b3   : > { %3430 = vmatprep.subr.bf16.mxu0 %v3670_v57  ;;  %3452 = vmatprep.subr.bf16.mxu1 %v3671_v58 }
 0x6b6   : > { %3431 = vmatpush3.bf16.msra.mxu0 %v3672_v59  ;;  %3453 = vmatpush3.bf16.msra.mxu1 %v3673_v60  ;;  %v3684_v59 = vld [vmem:[%s3960_s21 + $0x100] sm:$0xff]  }
 0x6b7   : > { %3432 = vmatprep.subr.bf16.mxu0 %v3674_v63  ;;  %3454 = vmatprep.subr.bf16.mxu1 %v3675_v0  ;;  %v3685_v60 = vld [vmem:[%s3960_s21 + $0x180] sm:$0xff]  }
 0x6ba   : > { %3433 = vmatpush3.bf16.msra.mxu0 %v3676_v1  ;;  %3455 = vmatpush3.bf16.msra.mxu1 %v3677_v2 }
 0x6bb   : > { %3434 = vmatprep.subr.bf16.mxu0 %v3678_v3  ;;  %3456 = vmatprep.subr.bf16.mxu1 %v3679_v4  ;;  %v3686_v3 = vld [vmem:[%s3960_s21 + $0x148] sm:$0xff]  }
 0x6bc   : > { %v3687_v4 = vld [vmem:[%s3960_s21 + $0x1c8] sm:$0xff]  }
 0x6be   : > { %3435 = vmatpush3.bf16.msra.mxu0 %v3680_v7  ;;  %3457 = vmatpush3.bf16.msra.mxu1 %v3681_v8  ;;  %v1039_v7 = vrot.slane %v4146_v12, %v1006_v14  ;;  %v1043_v14 = vrot.slane %v4146_v12, %v1010_v16  ;;  %v3691_v16 = vld [vmem:[%s3960_s21 + $0x1d0] sm:$0xff]  }
 0x6bf   : > { %3464 = vmatprep.subr.bf16.mxu0 %v3682_v9  ;;  %3486 = vmatprep.subr.bf16.mxu1 %v3683_v10 }
 0x75c   : > { %v1281_v23 = vpop.f32.mrb[8].mxu0  ;;  %v1324_v24 = vpop.f32.mrb[8].mxu1 }
 0x75d   : > { %v1282_v27 = vadd.f32 %v1281_v23, %v1007_v17  ;;  %v1325_v28 = vadd.f32 %v1324_v24, %v1015_v18  ;;  %v1283_v29 = vpop.f32.mrb[9].mxu0  ;;  %v1326_v30 = vpop.f32.mrb[9].mxu1 }
 0x75e   : > { %v1284_v31 = vadd.f32 %v1283_v29, %v1011_v20  ;;  %v1327_v32 = vadd.f32 %v1326_v30, %v1019_v21  ;;  %v1285_v33 = vpop.f32.mrb[10].mxu0  ;;  %v1328_v34 = vpop.f32.mrb[10].mxu1 }
 0x75f   : > { %v1286_v35 = vadd.f32 %v1285_v33, %v1007_v17  ;;  %v1329_v36 = vadd.f32 %v1328_v34, %v1015_v18  ;;  %v1287_v37 = vpop.f32.mrb[11].mxu0  ;;  %v1330_v38 = vpop.f32.mrb[11].mxu1  ;;  %v1591_v45 = vmax.f32 %v1282_v27, 0.0  ;;  %v1593_v46 = vmax.f32 %v1325_v28, 0.0  ;;  %v3688_v27 = vld [vmem:[%s3960_s21 + $0x108] sm:$0xff]   ;;  %v3690_v33 = vld [vmem:[%s3960_s21 + $0x150] sm:$0xff]  }
 0x760   : > { %v1288_v42 = vadd.f32 %v1287_v37, %v1011_v20  ;;  %v1331_v43 = vadd.f32 %v1330_v38, %v1019_v21  ;;  %v1592_v49 = vmax.f32 %v1284_v31, 0.0  ;;  %v1594_v50 = vmax.f32 %v1327_v32, 0.0  ;;  %v3689_v28 = vld [vmem:[%s3960_s21 + $0x188] sm:$0xff]  }
 0x761   : > { %v1607_v47 = vmax.f32 %v1286_v35, 0.0  ;;  %v1609_v48 = vmax.f32 %v1329_v36, 0.0 }
 0x762   : > { %v1608_v51 = vmax.f32 %v1288_v42, 0.0  ;;  %v1610_v52 = vmax.f32 %v1331_v43, 0.0 }
 0x763   : > { %v1623_v53 = vpack.c.bf16 %v1607_v47, %v1591_v45  ;;  %v1625_v54 = vpack.c.bf16 %v1609_v48, %v1593_v46 }
 0x764   : > { %v1624_v55 = vpack.c.bf16 %v1608_v51, %v1592_v49  ;;  %v1626_v56 = vpack.c.bf16 %v1610_v52, %v1594_v50  ;;  %v1367_v57 = vpop.f32.mrb[12].mxu0  ;;  %v1410_v58 = vpop.f32.mrb[12].mxu1  ;;  %v3694_v49 = vld [vmem:[%s3960_s21 + $0x158] sm:$0xff]  }
 0x765   : > { %v1368_v63 = vadd.f32 %v1367_v57, %v1023_v40  ;;  %v1411_v0 = vadd.f32 %v1410_v58, %v1031_v41  ;;  %v1369_v1 = vpop.f32.mrb[13].mxu0  ;;  %v1412_v2 = vpop.f32.mrb[13].mxu1  ;;  %v3695_v50 = vld [vmem:[%s3960_s21 + $0x1d8] sm:$0xff]  }
 0x766   : > { %v1370_v8 = vadd.f32 %v1369_v1, %v1027_v39  ;;  %v1413_v9 = vadd.f32 %v1412_v2, %v1035_v44  ;;  %v1371_v10 = vpop.f32.mrb[14].mxu0  ;;  %v1414_v11 = vpop.f32.mrb[14].mxu1  ;;  %2702 = vmatprep.mubr.bf16.mxu0 %v1624_v55  ;;  %2743 = vmatprep.mubr.bf16.mxu1 %v1626_v56  ;;  %v3696_v1 = vld [vmem:[%s3960_s21 + $0x118] sm:$0xff]  }
 0x767   : > { %v1372_v17 = vadd.f32 %v1371_v10, %v1023_v40  ;;  %v1415_v18 = vadd.f32 %v1414_v11, %v1031_v41  ;;  %v1373_v20 = vpop.f32.mrb[15].mxu0  ;;  %v1416_v21 = vpop.f32.mrb[15].mxu1  ;;  %2703 = vmatmul.mubr.bf16.vlgmr.msra.gmra.mrb[24].mxu0 %v1623_v53  ;;  %2744 = vmatmul.mubr.bf16.vlgmr.msra.gmra.mrb[24].mxu1 %v1625_v54  ;;  %v1595_v29 = vmax.f32 %v1368_v63, 0.0  ;;  %v1597_v30 = vmax.f32 %v1411_v0, 0.0  ;;  %v3697_v2 = vld [vmem:[%s3960_s21 + $0x198] sm:$0xff]  }
 0x768   : > { %v1374_v23 = vadd.f32 %v1373_v20, %v1027_v39  ;;  %v1417_v24 = vadd.f32 %v1416_v21, %v1035_v44  ;;  %3465 = vmatpush3.bf16.msra.mxu0 %v3684_v59  ;;  %3487 = vmatpush3.bf16.msra.mxu1 %v3685_v60  ;;  %v1596_v34 = vmax.f32 %v1370_v8, 0.0  ;;  %v1598_v35 = vmax.f32 %v1413_v9, 0.0  ;;  %v3692_v39 = vld [vmem:[%s3960_s21 + $0x110] sm:$0xff]  }
 0x769   : > { %v1611_v31 = vmax.f32 %v1372_v17, 0.0  ;;  %v1613_v32 = vmax.f32 %v1415_v18, 0.0  ;;  %3466 = vmatprep.subr.bf16.mxu0 %v3686_v3  ;;  %3488 = vmatprep.subr.bf16.mxu1 %v3687_v4  ;;  %v3693_v44 = vld [vmem:[%s3960_s21 + $0x190] sm:$0xff]   ;;  %v1055_v59 = vrot.slane %v4146_v12, %v1022_v22  ;;  %v1059_v60 = vrot.slane %v4146_v12, %v1026_v25  ;;  %v3698_v22 = vld [vmem:[%s3960_s21 + $0x160] sm:$0xff]  }
 0x76a   : > { %v1612_v36 = vmax.f32 %v1374_v23, 0.0  ;;  %v1614_v37 = vmax.f32 %v1417_v24, 0.0  ;;  %v1067_v3 = vrot.slane %v4146_v12, %v1034_v26  ;;  %v3699_v25 = vld [vmem:[%s3960_s21 + $0x1e0] sm:$0xff]  }
 0x76b   : > { %v4185_v38 = vpack.c.bf16 %v1611_v31, %v1595_v29  ;;  %v4187_v40 = vpack.c.bf16 %v1613_v32, %v1597_v30  ;;  %v3701_v23 = vld [vmem:[%s3960_s21 + $0x1a0] sm:$0xff]   ;;  %v3702_v29 = vld [vmem:[%s3960_s21 + $0x168] sm:$0xff]  }
 0x76c   : > { %v1628_v6 = vpack.c.bf16 %v1612_v36, %v1596_v34  ;;  %v1630_v41 = vpack.c.bf16 %v1614_v37, %v1598_v35  ;;  %3467 = vmatpush3.bf16.msra.mxu0 %v3688_v27  ;;  %3489 = vmatpush3.bf16.msra.mxu1 %v3689_v28  ;;  %v1453_v42 = vpop.f32.mrb[16].mxu0  ;;  %v1496_v43 = vpop.f32.mrb[16].mxu1  ;;  %v3703_v30 = vld [vmem:[%s3960_s21 + $0x1e8] sm:$0xff]  }
 0x76d   : > { %v1454_v45 = vadd.f32 %v1453_v42, %v1039_v7  ;;  %v1497_v46 = vadd.f32 %v1496_v43, %v1047_v5  ;;  %v1455_v47 = vpop.f32.mrb[17].mxu0  ;;  %v1498_v48 = vpop.f32.mrb[17].mxu1  ;;  %3468 = vmatprep.subr.bf16.mxu0 %v3690_v33  ;;  %3490 = vmatprep.subr.bf16.mxu1 %v3691_v16  ;;  %v3704_v42 = vld [vmem:[%s3960_s21 + $0x128] sm:$0xff]  }
 0x76e   : > { %v1456_v51 = vadd.f32 %v1455_v47, %v1043_v14  ;;  %v1499_v52 = vadd.f32 %v1498_v48, %v1051_v15  ;;  %v1457_v53 = vpop.f32.mrb[18].mxu0  ;;  %v1500_v54 = vpop.f32.mrb[18].mxu1  ;;  %2784 = vmatprep.mubr.bf16.mxu0 %v1628_v6  ;;  %2825 = vmatprep.mubr.bf16.mxu1 %v1630_v41  ;;  %v3705_v43 = vld [vmem:[%s3960_s21 + $0x1a8] sm:$0xff]   ;;  %v3706_v47 = vld [vmem:[%s3960_s21 + $0x170] sm:$0xff]  }
 0x76f   : > { %v1458_v55 = vadd.f32 %v1457_v53, %v1039_v7  ;;  %v1501_v56 = vadd.f32 %v1500_v54, %v1047_v5  ;;  %v1459_v57 = vpop.f32.mrb[19].mxu0  ;;  %v1502_v58 = vpop.f32.mrb[19].mxu1  ;;  %v1599_v4 = vmax.f32 %v1454_v45, 0.0  ;;  %v1601_v7 = vmax.f32 %v1497_v46, 0.0 }
 0x770   : > { %v1460_v63 = vadd.f32 %v1459_v57, %v1043_v14  ;;  %v1503_v0 = vadd.f32 %v1502_v58, %v1051_v15  ;;  %3469 = vmatpush3.bf16.msra.mxu0 %v3692_v39  ;;  %3491 = vmatpush3.bf16.msra.mxu1 %v3693_v44  ;;  %v1600_v10 = vmax.f32 %v1456_v51, 0.0  ;;  %v1602_v11 = vmax.f32 %v1499_v52, 0.0  ;;  %v3700_v14 = vld [vmem:[%s3960_s21 + $0x120] sm:$0xff]   ;;  %v3709_v57 = vld [vmem:[%s3960_s21 + $0x1b0] sm:$0xff]   ;;  %v3710_v58 = vld [vmem:[%s3960_s21 + $0x178] sm:$0xff]  }
 0x771   : > { %v1615_v8 = vmax.f32 %v1458_v55, 0.0  ;;  %v1617_v9 = vmax.f32 %v1501_v56, 0.0  ;;  %3470 = vmatprep.subr.bf16.mxu0 %v3694_v49  ;;  %3492 = vmatprep.subr.bf16.mxu1 %v3695_v50  ;;  %v3708_v56 = vld [vmem:[%s3960_s21 + $0x130] sm:$0xff]  }
 0x772   : > { %v1616_v5 = vmax.f32 %v1460_v63, 0.0  ;;  %v1618_v17 = vmax.f32 %v1503_v0, 0.0  ;;  %v3713_v63 = vld [vmem:[%s3960_s21 + $0x1b8] sm:$0xff]   ;;  %v3714_v0 = vld [vmem:[%s3960_s21 + $0x240] sm:$0xff]  }
 0x773   : > { %v4206_v18 = vpack.c.bf16 %v1615_v8, %v1599_v4  ;;  %v4208_v19 = vpack.c.bf16 %v1617_v9, %v1601_v7  ;;  %v3718_v4 = vld [vmem:[%s3960_s21 + $0x248] sm:$0xff]  }
 0x774   : > { %v4210_v12 = vpack.c.bf16 %v1616_v5, %v1600_v10  ;;  %v4212_v26 = vpack.c.bf16 %v1618_v17, %v1602_v11  ;;  %3471 = vmatpush3.bf16.msra.mxu0 %v3696_v1  ;;  %3493 = vmatpush3.bf16.msra.mxu1 %v3697_v2  ;;  %v1539_v20 = vpop.f32.mrb[20].mxu0  ;;  %v1582_v21 = vpop.f32.mrb[20].mxu1  ;;  %v3715_v1 = vld [vmem:[%s3960_s21 + $0x2c0] sm:$0xff]   ;;  %v3719_v7 = vld [vmem:[%s3960_s21 + $0x2c8] sm:$0xff]   ;;  %v3726_v10 = vld [vmem:[%s3960_s21 + $0x258] sm:$0xff]  }
 0x775   : > { %v1540_v24 = vadd.f32 %v1539_v20, %v1055_v59  ;;  %v1583_v27 = vadd.f32 %v1582_v21, %v4149_v13  ;;  %v1541_v28 = vpop.f32.mrb[21].mxu0  ;;  %v1584_v15 = vpop.f32.mrb[21].mxu1  ;;  %3472 = vmatprep.subr.bf16.mxu0 %v3698_v22  ;;  %3494 = vmatprep.subr.bf16.mxu1 %v3699_v25  ;;  %v3716_v2 = vld [vmem:[%s3960_s21 + $0x200] sm:$0xff]   ;;  %v3720_v8 = vld [vmem:[%s3960_s21 + $0x208] sm:$0xff]   ;;  %v3722_v22 = vld [vmem:[%s3960_s21 + $0x250] sm:$0xff]  }
 0x776   : > { %v1542_v31 = vadd.f32 %v1541_v28, %v1059_v60  ;;  %v1585_v32 = vadd.f32 %v1584_v15, %v1067_v3  ;;  %v1543_v33 = vpop.f32.mrb[22].mxu0  ;;  %v1586_v16 = vpop.f32.mrb[22].mxu1  ;;  %v3721_v9 = vld [vmem:[%s3960_s21 + $0x288] sm:$0xff]   ;;  %v3725_v25 = vld [vmem:[%s3960_s21 + $0x290] sm:$0xff]   ;;  %v3727_v11 = vld [vmem:[%s3960_s21 + $0x2d8] sm:$0xff]  }
 0x777   : > { %v1544_v34 = vadd.f32 %v1543_v33, %v1055_v59  ;;  %v1587_v35 = vadd.f32 %v1586_v16, %v4149_v13  ;;  %v1545_v36 = vpop.f32.mrb[23].mxu0  ;;  %v1588_v37 = vpop.f32.mrb[23].mxu1  ;;  %v1603_v39 = vmax.f32 %v1540_v24, 0.0  ;;  %v1605_v44 = vmax.f32 %v1583_v27, 0.0  ;;  %v3707_v13 = vld [vmem:[%s3960_s21 + $0x1f0] sm:$0xff]   ;;  %v3711_v59 = vld [vmem:[%s3960_s21 + $0x1f8] sm:$0xff]  }
 0x778   : > { %v1546_v6 = vadd.f32 %v1545_v36, %v1059_v60  ;;  %v1589_v41 = vadd.f32 %v1588_v37, %v1067_v3  ;;  %3473 = vmatpush3.bf16.msra.mxu0 %v3700_v14  ;;  %3495 = vmatpush3.bf16.msra.mxu1 %v3701_v23  ;;  %v1604_v48 = vmax.f32 %v1542_v31, 0.0  ;;  %v1606_v49 = vmax.f32 %v1585_v32, 0.0  ;;  %v3712_v60 = vld [vmem:[%s3960_s21 + $0x138] sm:$0xff]   ;;  %v3717_v3 = vld [vmem:[%s3960_s21 + $0x280] sm:$0xff]   ;;  %v3734_v14 = vld [vmem:[%s3960_s21 + $0x268] sm:$0xff]  }
 0x779   : > { %v1619_v45 = vmax.f32 %v1544_v34, 0.0  ;;  %v1621_v46 = vmax.f32 %v1587_v35, 0.0  ;;  %3474 = vmatprep.subr.bf16.mxu0 %v3702_v29  ;;  %3496 = vmatprep.subr.bf16.mxu1 %v3703_v30  ;;  %v3728_v5 = vld [vmem:[%s3960_s21 + $0x218] sm:$0xff]   ;;  %v3732_v20 = vld [vmem:[%s3960_s21 + $0x220] sm:$0xff]   ;;  %v3735_v23 = vld [vmem:[%s3960_s21 + $0x2e8] sm:$0xff]  }
 0x77a   : > { %v1620_v50 = vmax.f32 %v1546_v6, 0.0  ;;  %v1622_v51 = vmax.f32 %v1589_v41, 0.0  ;;  %v3729_v17 = vld [vmem:[%s3960_s21 + $0x298] sm:$0xff]   ;;  %v3733_v21 = vld [vmem:[%s3960_s21 + $0x2a0] sm:$0xff]   ;;  %v3736_v24 = vld [vmem:[%s3960_s21 + $0x228] sm:$0xff]  }
 0x77b   : > { %v4224_v52 = vpack.c.bf16 %v1619_v45, %v1603_v39  ;;  %v4226_v53 = vpack.c.bf16 %v1621_v46, %v1605_v44  ;;  %v3737_v27 = vld [vmem:[%s3960_s21 + $0x2a8] sm:$0xff]   ;;  %v3738_v28 = vld [vmem:[%s3960_s21 + $0x270] sm:$0xff]   ;;  %v3742_v31 = vld [vmem:[%s3960_s21 + $0x278] sm:$0xff]  }
 0x77c   : > { %v4228_v54 = vpack.c.bf16 %v1620_v50, %v1604_v48  ;;  %v4230_v55 = vpack.c.bf16 %v1622_v51, %v1606_v49  ;;  %3475 = vmatpush3.bf16.msra.mxu0 %v3704_v42  ;;  %3497 = vmatpush3.bf16.msra.mxu1 %v3705_v43  ;;  %v3739_v15 = vld [vmem:[%s3960_s21 + $0x2f0] sm:$0xff]   ;;  %v3743_v32 = vld [vmem:[%s3960_s21 + $0x2f8] sm:$0xff]   ;;  %v3746_v34 = vld [vmem:[%s3960_s21 + $0x340] sm:$0xff]  }
 0x77d   : > { %3476 = vmatprep.subr.bf16.mxu0 %v3706_v47  ;;  %3498 = vmatprep.subr.bf16.mxu1 %v3707_v13  ;;  %v3740_v29 = vld [vmem:[%s3960_s21 + $0x230] sm:$0xff]   ;;  %v3744_v33 = vld [vmem:[%s3960_s21 + $0x238] sm:$0xff]   ;;  %v3747_v35 = vld [vmem:[%s3960_s21 + $0x3c0] sm:$0xff]  }
 0x77e   : > { %v3741_v30 = vld [vmem:[%s3960_s21 + $0x2b0] sm:$0xff]   ;;  %v3745_v16 = vld [vmem:[%s3960_s21 + $0x2b8] sm:$0xff]   ;;  %v3748_v36 = vld [vmem:[%s3960_s21 + $0x300] sm:$0xff]  }
 0x77f   : > { %v3749_v37 = vld [vmem:[%s3960_s21 + $0x380] sm:$0xff]   ;;  %v3750_v6 = vld [vmem:[%s3960_s21 + $0x348] sm:$0xff]   ;;  %v3754_v39 = vld [vmem:[%s3960_s21 + $0x350] sm:$0xff]  }
 0x780   : > { %3477 = vmatpush3.bf16.msra.mxu0 %v3708_v56  ;;  %3499 = vmatpush3.bf16.msra.mxu1 %v3709_v57  ;;  %v3751_v41 = vld [vmem:[%s3960_s21 + $0x3c8] sm:$0xff]   ;;  %v3757_v44 = vld [vmem:[%s3960_s21 + $0x390] sm:$0xff]   ;;  %v3758_v45 = vld [vmem:[%s3960_s21 + $0x358] sm:$0xff]  }
 0x781   : > { %3478 = vmatprep.subr.bf16.mxu0 %v3710_v58  ;;  %3500 = vmatprep.subr.bf16.mxu1 %v3711_v59  ;;  %v3752_v42 = vld [vmem:[%s3960_s21 + $0x308] sm:$0xff]   ;;  %v3759_v46 = vld [vmem:[%s3960_s21 + $0x3d8] sm:$0xff]   ;;  %v3762_v48 = vld [vmem:[%s3960_s21 + $0x360] sm:$0xff]  }
 0x782   : > { %v3753_v43 = vld [vmem:[%s3960_s21 + $0x388] sm:$0xff]   ;;  %v3760_v47 = vld [vmem:[%s3960_s21 + $0x318] sm:$0xff]   ;;  %v3763_v49 = vld [vmem:[%s3960_s21 + $0x3e0] sm:$0xff]  }
 0x783   : > { %v3761_v13 = vld [vmem:[%s3960_s21 + $0x398] sm:$0xff]   ;;  %v3764_v50 = vld [vmem:[%s3960_s21 + $0x320] sm:$0xff]   ;;  %v3768_v56 = vld [vmem:[%s3960_s21 + $0x328] sm:$0xff]  }
 0x784   : > { %3479 = vmatpush3.bf16.msra.mxu0 %v3712_v60  ;;  %3501 = vmatpush3.bf16.msra.mxu1 %v3713_v63  ;;  %v3765_v51 = vld [vmem:[%s3960_s21 + $0x3a0] sm:$0xff]   ;;  %v3769_v57 = vld [vmem:[%s3960_s21 + $0x3a8] sm:$0xff]   ;;  %v3770_v58 = vld [vmem:[%s3960_s21 + $0x370] sm:$0xff]  }
 0x785   : > { %3508 = vmatprep.subr.bf16.mxu0 %v3714_v0  ;;  %3530 = vmatprep.subr.bf16.mxu1 %v3715_v1  ;;  %v3771_v59 = vld [vmem:[%s3960_s21 + $0x3f0] sm:$0xff]   ;;  %v3774_v0 = vld [vmem:[%s3960_s21 + $0x378] sm:$0xff]  }
 0x786   : > { %v3772_v60 = vld [vmem:[%s3960_s21 + $0x330] sm:$0xff]   ;;  %v3775_v1 = vld [vmem:[%s3960_s21 + $0x3f8] sm:$0xff]  }
 0x787   : > { %2785 = vmatmul.mubr.bf16.vlgmr.msra.gmra.mrb[28].mxu0 %v4185_v38  ;;  %2826 = vmatmul.mubr.bf16.vlgmr.msra.gmra.mrb[28].mxu1 %v4187_v40  ;;  %v3723_v38 = vld [vmem:[%s3960_s21 + $0x2d0] sm:$0xff]  }
 0x788   : > { %3509 = vmatpush3.bf16.msra.mxu0 %v3716_v2  ;;  %2866 = vmatprep.mubr.bf16.mxu0 %v4210_v12  ;;  %v3724_v40 = vld [vmem:[%s3960_s21 + $0x210] sm:$0xff]   ;;  %v3730_v12 = vld [vmem:[%s3960_s21 + $0x260] sm:$0xff]   ;;  %v3776_v2 = vld [vmem:[%s3960_s21 + $0x338] sm:$0xff]  }
 0x789   : > { %3531 = vmatpush3.bf16.msra.mxu1 %v3717_v3  ;;  %2907 = vmatprep.mubr.bf16.mxu1 %v4212_v26  ;;  %v3731_v26 = vld [vmem:[%s3960_s21 + $0x2e0] sm:$0xff]   ;;  %v3773_v63 = vld [vmem:[%s3960_s21 + $0x3b0] sm:$0xff]   ;;  %v3777_v3 = vld [vmem:[%s3960_s21 + $0x3b8] sm:$0xff]  }
 0x78a   : > { %3510 = vmatprep.subr.bf16.mxu0 %v3718_v4  ;;  %3532 = vmatprep.subr.bf16.mxu1 %v3719_v7 }
 0x78c   : > { %3511 = vmatpush3.bf16.msra.mxu0 %v3720_v8  ;;  %v3271_v8 = vld [vmem:[%s589_s19] ss:$0 sm:$0xff] }
 0x78d   : > { %3533 = vmatpush3.bf16.msra.mxu1 %v3721_v9  ;;  %3512 = vmatprep.subr.bf16.mxu0 %v3722_v22 }
 0x78e   : > { %3534 = vmatprep.subr.bf16.mxu1 %v3723_v38 }
 0x790   : > { %3513 = vmatpush3.bf16.msra.mxu0 %v3724_v40 }
 0x791   : > { %3535 = vmatpush3.bf16.msra.mxu1 %v3725_v25  ;;  %3514 = vmatprep.subr.bf16.mxu0 %v3726_v10 }
 0x792   : > { %3536 = vmatprep.subr.bf16.mxu1 %v3727_v11 }
 0x794   : > { %3515 = vmatpush3.bf16.msra.mxu0 %v3728_v5 }
 0x795   : > { %3537 = vmatpush3.bf16.msra.mxu1 %v3729_v17  ;;  %3516 = vmatprep.subr.bf16.mxu0 %v3730_v12 }
 0x796   : > { %3538 = vmatprep.subr.bf16.mxu1 %v3731_v26 }
 0x798   : > { %3517 = vmatpush3.bf16.msra.mxu0 %v3732_v20 }
 0x799   : > { %3539 = vmatpush3.bf16.msra.mxu1 %v3733_v21  ;;  %3518 = vmatprep.subr.bf16.mxu0 %v3734_v14 }
 0x79a   : > { %3540 = vmatprep.subr.bf16.mxu1 %v3735_v23 }
 0x79c   : > { %3519 = vmatpush3.bf16.msra.mxu0 %v3736_v24 }
 0x79d   : > { %3541 = vmatpush3.bf16.msra.mxu1 %v3737_v27  ;;  %3520 = vmatprep.subr.bf16.mxu0 %v3738_v28 }
 0x79e   : > { %3542 = vmatprep.subr.bf16.mxu1 %v3739_v15 }
 0x7a0   : > { %3521 = vmatpush3.bf16.msra.mxu0 %v3740_v29 }
 0x7a1   : > { %3543 = vmatpush3.bf16.msra.mxu1 %v3741_v30  ;;  %3522 = vmatprep.subr.bf16.mxu0 %v3742_v31 }
 0x7a2   : > { %3544 = vmatprep.subr.bf16.mxu1 %v3743_v32 }
 0x7a4   : > { %3523 = vmatpush3.bf16.msra.mxu0 %v3744_v33 }
 0x7a5   : > { %3545 = vmatpush3.bf16.msra.mxu1 %v3745_v16  ;;  %3552 = vmatprep.subr.bf16.mxu0 %v3746_v34 }
 0x7a6   : > { %3574 = vmatprep.subr.bf16.mxu1 %v3747_v35 }
 0x7a7   : > { %2867 = vmatmul.mubr.bf16.vlgmr.msra.gmra.mrb[32].mxu0 %v4206_v18  ;;  %v3755_v18 = vld [vmem:[%s3960_s21 + $0x3d0] sm:$0xff]  }
 0x7a8   : > { %2908 = vmatmul.mubr.bf16.vlgmr.msra.gmra.mrb[32].mxu1 %v4208_v19  ;;  %3553 = vmatpush3.bf16.msra.mxu0 %v3748_v36  ;;  %v3756_v19 = vld [vmem:[%s3960_s21 + $0x310] sm:$0xff]  }
 0x7a9   : > { %2948 = vmatprep.mubr.bf16.mxu0 %v4228_v54  ;;  %3575 = vmatpush3.bf16.msra.mxu1 %v3749_v37  ;;  %v3766_v54 = vld [vmem:[%s3960_s21 + $0x368] sm:$0xff]  }
 0x7aa   : > { %2989 = vmatprep.mubr.bf16.mxu1 %v4230_v55  ;;  %3554 = vmatprep.subr.bf16.mxu0 %v3750_v6  ;;  %v3767_v55 = vld [vmem:[%s3960_s21 + $0x3e8] sm:$0xff]  }
 0x7ab   : > { %3576 = vmatprep.subr.bf16.mxu1 %v3751_v41 }
 0x7ac   : > { %3555 = vmatpush3.bf16.msra.mxu0 %v3752_v42 }
 0x7ad   : > { %3577 = vmatpush3.bf16.msra.mxu1 %v3753_v43  ;;  %3556 = vmatprep.subr.bf16.mxu0 %v3754_v39 }
 0x7ae   : > { %3578 = vmatprep.subr.bf16.mxu1 %v3755_v18 }
 0x7b0   : > { %3557 = vmatpush3.bf16.msra.mxu0 %v3756_v19 }
 0x7b1   : > { %3579 = vmatpush3.bf16.msra.mxu1 %v3757_v44  ;;  %3558 = vmatprep.subr.bf16.mxu0 %v3758_v45 }
 0x7b2   : > { %3580 = vmatprep.subr.bf16.mxu1 %v3759_v46 }
 0x7b4   : > { %3559 = vmatpush3.bf16.msra.mxu0 %v3760_v47 }
 0x7b5   : > { %3581 = vmatpush3.bf16.msra.mxu1 %v3761_v13  ;;  %3560 = vmatprep.subr.bf16.mxu0 %v3762_v48 }
 0x7b6   : > { %3582 = vmatprep.subr.bf16.mxu1 %v3763_v49 }
 0x7b8   : > { %3561 = vmatpush3.bf16.msra.mxu0 %v3764_v50 }
 0x7b9   : > { %3583 = vmatpush3.bf16.msra.mxu1 %v3765_v51  ;;  %3562 = vmatprep.subr.bf16.mxu0 %v3766_v54 }
 0x7ba   : > { %3584 = vmatprep.subr.bf16.mxu1 %v3767_v55 }
 0x7bc   : > { %3563 = vmatpush3.bf16.msra.mxu0 %v3768_v56 }
 0x7bd   : > { %3585 = vmatpush3.bf16.msra.mxu1 %v3769_v57  ;;  %3564 = vmatprep.subr.bf16.mxu0 %v3770_v58 }
 0x7be   : > { %3586 = vmatprep.subr.bf16.mxu1 %v3771_v59 }
 0x7c0   : > { %3565 = vmatpush3.bf16.msra.mxu0 %v3772_v60 }
 0x7c1   : > { %3587 = vmatpush3.bf16.msra.mxu1 %v3773_v63  ;;  %3566 = vmatprep.subr.bf16.mxu0 %v3774_v0 }
 0x7c2   : > { %3588 = vmatprep.subr.bf16.mxu1 %v3775_v1 }
 0x7c4   : > { %3567 = vmatpush3.bf16.msra.mxu0 %v3776_v2 }
 0x7c5   : > { %3589 = vmatpush3.bf16.msra.mxu1 %v3777_v3 }
 0x7c7   : > { %2949 = vmatmul.mubr.bf16.vlgmr.msra.gmra.mrb[36].mxu0 %v4224_v52 }
 0x7c8   : > { %2990 = vmatmul.mubr.bf16.vlgmr.msra.gmra.mrb[36].mxu1 %v4226_v53 }
 0x83a   : > { %v3436_v4 = vpop.f32.mrb[24].mxu0  ;;  %v3458_v7 = vpop.f32.mrb[24].mxu1 }
 0x83b   : > { %v3437_v9 = vpop.f32.mrb[25].mxu0  ;;  %v3459_v22 = vpop.f32.mrb[25].mxu1 }
 0x83c   : > { %v3438_v38 = vadd.f32 %v3437_v9, %v3436_v4  ;;  %v3460_v40 = vadd.f32 %v3459_v22, %v3458_v7  ;;  %v3439_v25 = vpop.f32.mrb[26].mxu0  ;;  %v3461_v10 = vpop.f32.mrb[26].mxu1 }
 0x83d   : > { %v3440_v11 = vpop.f32.mrb[27].mxu0  ;;  %v3462_v5 = vpop.f32.mrb[27].mxu1 }
 0x83e   : > { %v2705_v17 = vadd.f32 %v3438_v38, %v3271_v8  ;;  %v3441_v12 = vadd.f32 %v3440_v11, %v3439_v25  ;;  %v3463_v52 = vadd.f32 %v3462_v5, %v3461_v10 }
 0x840   : > { %v2746_v26 = vadd.f32 %v3460_v40, %v2705_v17  ;;  %v2708_v53 = vadd.f32 %v3441_v12, %v3271_v8 }
 0x842   : > { %v2749_v20 = vadd.f32 %v3463_v52, %v2708_v53 }
 0x85a   : > { %v3480_v21 = vpop.f32.mrb[28].mxu0  ;;  %v3502_v14 = vpop.f32.mrb[28].mxu1 }
 0x85b   : > { %v3481_v23 = vpop.f32.mrb[29].mxu0  ;;  %v3503_v24 = vpop.f32.mrb[29].mxu1 }
 0x85c   : > { %v3482_v27 = vadd.f32 %v3481_v23, %v3480_v21  ;;  %v3504_v28 = vadd.f32 %v3503_v24, %v3502_v14  ;;  %v3483_v15 = vpop.f32.mrb[30].mxu0  ;;  %v3505_v29 = vpop.f32.mrb[30].mxu1 }
 0x85d   : > { %v3484_v30 = vpop.f32.mrb[31].mxu0  ;;  %v3506_v31 = vpop.f32.mrb[31].mxu1 }
 0x85e   : > { %v2787_v32 = vadd.f32 %v3482_v27, %v2746_v26  ;;  %v3485_v33 = vadd.f32 %v3484_v30, %v3483_v15  ;;  %v3507_v16 = vadd.f32 %v3506_v31, %v3505_v29  ;;  %v3401_v29 = vld [vmem:[%s601_s18] ss:$0 sm:$0xff] }
 0x860   : > { %v2828_v34 = vadd.f32 %v3504_v28, %v2787_v32  ;;  %v2790_v35 = vadd.f32 %v3485_v33, %v2749_v20  ;;  %v3400_v28 = vld [vmem:[%s598_s5] ss:$0 sm:$0xff]  ;;  %s3794_s5 = scalar_lea.vmem %s3053_s17, 256 }
 0x861   : > { %p3795_p6 = scmp.ne.s32.totalorder %s3053_s17, %s3794_s5  ;;  %p3802_p10 = scmp.lt.s32.totalorder %s3794_s5, %s3794_s5 }
 0x862   : > { %v2831_v36 = vadd.f32 %v3507_v16, %v2790_v35 }
 0x863   : > { %p3796_p7 = pnand %p3795_p6, %p3628_p5  ;;  %p3803_p11 = por %p3802_p10, %p3801_p9 }
 0x865   : > { %p3797_p8 = pneg %p3796_p7 }
 0x867   : > { %p3804_p12 = pnand %p3803_p11, %p3797_p8 }
 0x87a   : > { %v3524_v37 = vpop.f32.mrb[32].mxu0 }
 0x87b   : > { %v3546_v6 = vpop.f32.mrb[32].mxu1  ;;  %v3525_v41 = vpop.f32.mrb[33].mxu0 }
 0x87c   : > { %v3526_v42 = vadd.f32 %v3525_v41, %v3524_v37  ;;  %v3547_v43 = vpop.f32.mrb[33].mxu1  ;;  %v3527_v39 = vpop.f32.mrb[34].mxu0 }
 0x87d   : > { %v3548_v18 = vadd.f32 %v3547_v43, %v3546_v6  ;;  %v3549_v19 = vpop.f32.mrb[34].mxu1  ;;  %v3528_v44 = vpop.f32.mrb[35].mxu0 }
 0x87e   : > { %v2869_v45 = vadd.f32 %v3526_v42, %v2828_v34  ;;  %v3529_v46 = vadd.f32 %v3528_v44, %v3527_v39  ;;  %v3550_v47 = vpop.f32.mrb[35].mxu1 }
 0x87f   : > { %v3551_v13 = vadd.f32 %v3550_v47, %v3549_v19 }
 0x880   : > { %v2910_v48 = vadd.f32 %v3548_v18, %v2869_v45  ;;  %v2872_v49 = vadd.f32 %v3529_v46, %v2831_v36 }
 0x882   : > { %v2913_v50 = vadd.f32 %v3551_v13, %v2872_v49 }
 0x89a   : > { %v3568_v51 = vpop.f32.mrb[36].mxu0 }
 0x89b   : > { %v3590_v54 = vpop.f32.mrb[36].mxu1  ;;  %v3569_v55 = vpop.f32.mrb[37].mxu0 }
 0x89c   : > { %v3570_v56 = vadd.f32 %v3569_v55, %v3568_v51  ;;  %v3591_v57 = vpop.f32.mrb[37].mxu1  ;;  %v3571_v58 = vpop.f32.mrb[38].mxu0 }
 0x89d   : > { %v3592_v59 = vadd.f32 %v3591_v57, %v3590_v54  ;;  %v3593_v60 = vpop.f32.mrb[38].mxu1  ;;  %v3572_v63 = vpop.f32.mrb[39].mxu0 }
 0x89e   : > { %v2951_v0 = vadd.f32 %v3570_v56, %v2910_v48  ;;  %v3573_v1 = vadd.f32 %v3572_v63, %v3571_v58  ;;  %v3594_v2 = vpop.f32.mrb[39].mxu1 }
 0x89f   : > { %v3595_v3 = vadd.f32 %v3594_v2, %v3593_v60 }
 0x8a0   : > { %v2992_v4 = vadd.f32 %v3592_v59, %v2951_v0  ;;  %v2954_v7 = vadd.f32 %v3573_v1, %v2913_v50 }
 0x8a2   : > { %v2995_v8 = vadd.f32 %v3595_v3, %v2954_v7  ;;  %v2998_v9 = vadd.f32 %v2992_v4, %v4064_v61 }
 0x8a4   : > { %v3002_v22 = vsel %vm638_vm2, %v2998_v9, 0.0  ;;  %v2999_v38 = vadd.f32 %v2995_v8, %v4066_v62 }
 0x8a5   : > { %3003 = vadd.xlane.f32.xlu0 %v3002_v22 }
 0x8a6   : > { %v3005_v40 = vsel %vm638_vm2, %v2999_v38, 0.0 }
 0x8a9   : > { %3006 = vadd.xlane.f32.xlu0 %v3005_v40 }
 0x932   : > { %v3004_v25 = vpop.xlane.xlu0 %3003 }
 0x933   : > { %v3008_v10 = vmul.f32 0.03125, %v3004_v25 }
 0x935   : > { %v3010_v11 = vsub.f32 %v2998_v9, %v3008_v10 }
 0x936   : > { %v3007_v5 = vpop.xlane.xlu0 %3006 }
 0x937   : > { %v3009_v17 = vmul.f32 0.03125, %v3007_v5  ;;  %v3012_v12 = vmul.f32 %v3010_v11, %v3010_v11 }
 0x939   : > { %v3011_v52 = vsub.f32 %v2999_v38, %v3009_v17  ;;  %v3014_v26 = vsel %vm638_vm2, %v3012_v12, 0.0 }
 0x93a   : > { %3015 = vadd.xlane.f32.xlu0 %v3014_v26 }
 0x93b   : > { %v3013_v61 = vmul.f32 %v3011_v52, %v3011_v52 }
 0x93d   : > { %v3017_v53 = vsel %vm638_vm2, %v3013_v61, 0.0 }
 0x93e   : > { %3018 = vadd.xlane.f32.xlu0 %v3017_v53 }
 0x9c7   : > { %v3016_v62 = vpop.xlane.xlu0 %3015 }
 0x9c8   : > { %v3020_v20 = vmul.f32 0.03125, %v3016_v62 }
 0x9ca   : > { %v3022_v21 = vadd.f32 1e-05, %v3020_v20 }
 0x9cb   : > { %v3019_v14 = vpop.xlane.xlu0 %3018 }
 0x9cc   : > { %3790 = vrsqrt.f32 %v3022_v21  ;;  %v3021_v23 = vmul.f32 0.03125, %v3019_v14 }
 0x9ce   : > { %v3023_v24 = vadd.f32 1e-05, %v3021_v23 }
 0x9d0   : > { %3792 = vrsqrt.f32 %v3023_v24 }
 0x9d6   : > { %v3791_v27 = vpop.eup %3790 }
 0x9d7   : > { %v3026_v15 = vmul.f32 %v3791_v27, %v3010_v11 }
 0x9d9   : > { %v3034_v30 = vmul.f32 %v3400_v28, %v3026_v15 }
 0x9da   : > { %v3793_v31 = vpop.eup %3792 }
 0x9db   : > { %v3027_v32 = vmul.f32 %v3793_v31, %v3011_v52  ;;  %v3042_v33 = vadd.f32 %v3401_v29, %v3034_v30 }
 0x9dd   : > { %v3035_v16 = vmul.f32 %v3400_v28, %v3027_v32  ;;  %3044 = vst.msk [vmem:[#allocation2] sm:$0xff] %vm638_vm2, %v3042_v33 }
 0x9df   : > { %v3043_v34 = vadd.f32 %v3401_v29, %v3035_v16 }
 0x9e1   : > { %3045 = vst.msk [vmem:[#allocation2 + $0x8] sm:$0xff] %vm638_vm2, %v3043_v34 }
 0x9e2   : > { %3807 = shalt.err (!%p3804_p12)
}
 0x9e3   : > { %s4392_s25 = sld [smem:[#allocation11_spill]] }
 0x9e9   : > { %s4393_s24 = smov %s4392_s25  ;;  %s3808_s28 = scalar_lea.hbm %s4392_s25, 256 }
 0x9ea   : > { %p3809_p13 = scmp.ne.s32.totalorder %s4393_s24, %s3808_s28  ;;  %p3814_p2 = scmp.lt.u32.totalorder %s3808_s28, %s4393_s24 }
 0x9ec   : > { %p3810_p0 = pnand %p3809_p13, %p3628_p5 }
 0x9ee   : > { %p3811_p1 = pneg %p3810_p0 }
 0x9f0   : > { %p3816_p3 = pnand %p3814_p2, %p3811_p1 }
 0x9f2   : > { %3819 = shalt.err (!%p3816_p3)
}
 0x9f3   : > { %s3838_s3 = smov 128   ;;  %s3839_s23 = smov 8  }
 0x9f4   : > { %3625 = dma.vmem_to_hbm [thread:$0]  (%p3628_p5), %s3053_s17, 256, %s4393_s24, [#allocation3], %s3838_s3, %s3838_s3, %s3839_s23  }
 0x9f5   : > { %3825 = dma.done.wait (%p3628_p5), [#allocation3], 256  }
 0x9f6   : > { %3827 = vsyncadd (%p3628_p5), [#allocation3], 4294967040 }
 0x9f7 PF: > { %s4394_s15 = sld [smem:[#allocation5_spill]] }
 0x9fd   : > { %s24_s25 = sadd.s32 1, %s4394_s15  }
 0x9fe   : > { %p21_p4 = scmp.ge.s32.totalorder %s24_s25, 4  }
 0xa00   :  { %23 = sbr.rel (!%p21_p4) target bundleno = 8 (0x8), region = 136 }
 0xa07   :  { %3068 = vsyncpa [#allocation3], 1 }
 0xa08   :  { %3070 = vsyncpa [#allocation3 + $0x1], 1 }

</bundles_post_ra>
